<compile_context>
chip_gen: v5e
topology: v5e:2x2
jax: 0.10.0
libtpu: 0.0.40
codegen_flags: <defaults>
</compile_context>

<pallas_src>
import math
import jax
import jax.numpy as jnp
from jax.experimental import pallas as pl
from jax.experimental.pallas import tpu as pltpu  # noqa: F401  (kept for TPU-specific tuning hooks)

# ----------------------------- model dims (small, synthetic) ------------------
L = 8        # num_tokens (sequence length)
N = 2        # batch
E = 32       # embedding dim (d_model)
H = 4        # attention heads
DH = E // H  # head dim
FF = 4 * E   # MLP hidden
EPS = 1e-5


def _layernorm(v, w, b):
    mu = jnp.mean(v, axis=-1, keepdims=True)
    var = jnp.mean((v - mu) ** 2, axis=-1, keepdims=True)
    return (v - mu) * jax.lax.rsqrt(var + EPS) * w + b


# ----------------------------- Pallas kernel ---------------------------------
def _block_kernel(x_ref,
                  ln1w_ref, ln1b_ref, ln2w_ref, ln2b_ref,
                  w_in_ref, b_in_ref,
                  w_out_ref, b_out_ref,
                  w_fc_t_ref, b_fc_ref,
                  w_proj_t_ref, b_proj_ref,
                  out_x_ref, out_attn_ref):
    f32 = jnp.float32
    bf16 = jnp.bfloat16

    # Read parameters once (hoisted out of the static batch loop).
    ln1w, ln1b = ln1w_ref[...], ln1b_ref[...]          # (1, E)
    ln2w, ln2b = ln2w_ref[...], ln2b_ref[...]
    w_in, b_in = w_in_ref[...], b_in_ref[...]          # (3E, E) bf16, (3E, 1) f32
    w_out, b_out = w_out_ref[...], b_out_ref[...]      # (E, E) bf16,  (E, 1) f32
    w_fc_t, b_fc = w_fc_t_ref[...], b_fc_ref[...]      # (E, FF) bf16, (1, FF) f32
    w_proj_t, b_proj = w_proj_t_ref[...], b_proj_ref[...]  # (FF, E) bf16, (1, E) f32

    scale = 1.0 / math.sqrt(DH)

    for n in range(N):  # static loop over the (tiny) batch — single kernel invocation
        x_n = x_ref[:, n, :]                                        # (L, E) f32

        # ---------------- attention on layer_norm_1(x) ----------------
        y1 = _layernorm(x_n, ln1w, ln1b)                            # (L, E)
        # Transposed projection: qkv^T = W_in @ y1^T, so the head split below is a
        # tile-aligned sublane reshape instead of narrow lane slices + concat.
        y1t = y1.T.astype(bf16)                                     # (E, L)
        qkv_t = jnp.dot(w_in, y1t,
                        preferred_element_type=f32) + b_in          # (3E, L) f32

        q_t = qkv_t[0 * E:1 * E, :].reshape(H, DH, L)               # (H, DH, L)
        k_t = qkv_t[1 * E:2 * E, :].reshape(H, DH, L)
        v_t = qkv_t[2 * E:3 * E, :].reshape(H, DH, L)

        q_hld = jnp.swapaxes(q_t, 1, 2) * scale                     # (H, L, DH)

        # Heads batched into a single contraction each (no per-head Python loop).
        s = jnp.einsum("hld,hdm->hlm", q_hld, k_t,
                       preferred_element_type=f32)                  # (H, L, L)
        s = s - jnp.max(s, axis=-1, keepdims=True)
        p = jnp.exp(s)
        p = p * pl.reciprocal(jnp.sum(p, axis=-1, keepdims=True), approx=True)

        # PyTorch default: attention weights averaged over heads.
        out_attn_ref[n, :, :] = jnp.mean(p, axis=0).astype(out_attn_ref.dtype)

        ctx_t = jnp.einsum("hdm,hlm->hdl", v_t, p,
                           preferred_element_type=f32)              # (H, DH, L)
        ctx_t = ctx_t.reshape(E, L)                                 # (E, L)
        attn_out_t = jnp.dot(w_out, ctx_t.astype(bf16),
                             preferred_element_type=f32) + b_out    # (E, L)
        x1 = x_n + attn_out_t.T                                     # (L, E)

        # ---------------- MLP on layer_norm_2(x1), QuickGELU ----------------
        y2 = _layernorm(x1, ln2w, ln2b)
        hdn = jnp.dot(y2.astype(bf16), w_fc_t,
                      preferred_element_type=f32) + b_fc            # (L, FF)
        hdn = hdn * jax.nn.sigmoid(1.702 * hdn)                     # QuickGELU
        mlp = jnp.dot(hdn.astype(bf16), w_proj_t,
                      preferred_element_type=f32) + b_proj          # (L, E)

        out_x_ref[:, n, :] = (x1 + mlp).astype(out_x_ref.dtype)


def custom_block_forward(x_lne, params):
    """x_lne: (L, N, E) float32, PyTorch nn.MultiheadAttention layout.

    Returns (out_x (L, N, E), attn_weights (N, L, L)).  Single pallas_call, no grid,
    whole problem resident in VMEM (total footprint << VMEM on v5e/v6e/v7x).
    """
    out_x, out_attn = pl.pallas_call(
        _block_kernel,
        out_shape=(jax.ShapeDtypeStruct((L, N, E), jnp.float32),
                   jax.ShapeDtypeStruct((N, L, L), jnp.float32)),
    )(x_lne,
      params["ln1_w"], params["ln1_b"], params["ln2_w"], params["ln2_b"],
      params["w_in"], params["b_in"],
      params["w_out"], params["b_out"],
      params["w_fc_t"], params["b_fc"],
      params["w_proj_t"], params["b_proj"])
    return out_x, out_attn


# ----------------------------- pure-JAX reference -----------------------------
# Mirrors the kernel's precision choice: bf16 matmul operands, f32 accumulation
# (the standard fp16/bf16 CLIP deployment precision).  Structure follows PyTorch
# MultiheadAttention + QuickGELU MLP exactly.
def _reference(x_lne, p):
    f32 = jnp.float32
    bf16 = jnp.bfloat16

    def ln(v, w, b):
        mu = jnp.mean(v, axis=-1, keepdims=True)
        var = jnp.mean((v - mu) ** 2, axis=-1, keepdims=True)
        return (v - mu) / jnp.sqrt(var + EPS) * w + b

    x = x_lne                                                     # (L, N, E)
    y1 = ln(x, p["ln1_w"][0], p["ln1_b"][0])
    qkv = jnp.einsum("lne,fe->lnf", y1.astype(bf16), p["w_in"],
                     preferred_element_type=f32) + p["b_in"][:, 0]
    q = qkv[..., :E].reshape(L, N, H, DH)
    k = qkv[..., E:2 * E].reshape(L, N, H, DH)
    v = qkv[..., 2 * E:].reshape(L, N, H, DH)
    s = jnp.einsum("lnhd,mnhd->nhlm", q, k) / math.sqrt(DH)
    pw = jax.nn.softmax(s, axis=-1)                               # (N, H, L, L)
    ctx = jnp.einsum("nhlm,mnhd->lnhd", pw, v).reshape(L, N, E)
    attn_out = jnp.einsum("lne,fe->lnf", ctx.astype(bf16), p["w_out"],
                          preferred_element_type=f32) + p["b_out"][:, 0]
    x1 = x + attn_out
    y2 = ln(x1, p["ln2_w"][0], p["ln2_b"][0])
    h = jnp.einsum("lne,ef->lnf", y2.astype(bf16), p["w_fc_t"],
                   preferred_element_type=f32) + p["b_fc"][0]
    h = h * jax.nn.sigmoid(1.702 * h)
    x2 = x1 + jnp.einsum("lnf,fe->lne", h.astype(bf16), p["w_proj_t"],
                         preferred_element_type=f32) + p["b_proj"][0]
    return x2, jnp.mean(pw, axis=1)                               # (L,N,E), (N,L,L)


# ----------------------------- setup & run ------------------------------------
def _make_params(key):
    ks = jax.random.split(key, 8)
    sc = 0.05
    bf16 = jnp.bfloat16
    # Weight layouts (PyTorch): in_proj_weight (3E,E), out_proj.weight (E,E),
    # c_fc.weight stored transposed (E,FF), c_proj.weight stored transposed (FF,E).
    # Weights pre-cast to bf16 once (MXU-native operands, f32 accumulation).
    return {
        "ln1_w": jnp.ones((1, E), jnp.float32),
        "ln1_b": jnp.zeros((1, E), jnp.float32),
        "ln2_w": jnp.ones((1, E), jnp.float32),
        "ln2_b": jnp.zeros((1, E), jnp.float32),
        "w_in":     (sc * jax.random.normal(ks[0], (3 * E, E), jnp.float32)).astype(bf16),
        "b_in":      sc * jax.random.normal(ks[1], (3 * E, 1), jnp.float32),
        "w_out":    (sc * jax.random.normal(ks[2], (E, E), jnp.float32)).astype(bf16),
        "b_out":     sc * jax.random.normal(ks[3], (E, 1), jnp.float32),
        "w_fc_t":   (sc * jax.random.normal(ks[4], (E, FF), jnp.float32)).astype(bf16),
        "b_fc":      sc * jax.random.normal(ks[5], (1, FF), jnp.float32),
        "w_proj_t": (sc * jax.random.normal(ks[6], (FF, E), jnp.float32)).astype(bf16),
        "b_proj":    sc * jax.random.normal(ks[7], (1, E), jnp.float32),
    }


if __name__ == "__main__":
    key = jax.random.PRNGKey(0)
    kx, kp = jax.random.split(key)
    x = jax.random.normal(kx, (L, N, E), jnp.float32)   # (num_tokens, batch, dim)
    params = _make_params(kp)

    out_x, out_attn = custom_block_forward(x, params)
    out_x, out_attn = jax.block_until_ready((out_x, out_attn))

    ref_x, ref_attn = _reference(x, params)
    assert out_x.shape == (L, N, E) and out_attn.shape == (N, L, L)
    # 2e-3 covers accumulation-order differences and the EUP approx-reciprocal in softmax.
    assert jnp.allclose(out_x, ref_x, atol=2e-3, rtol=2e-3)
    assert jnp.allclose(out_attn, ref_attn, atol=2e-3, rtol=2e-3)
    print("KERNEL_OK")
</pallas_src>

<mosaic_0001>
module attributes {stable_mosaic.version = 11 : i64} {
  func.func @_block_kernel(%arg0: memref<8x2x32xf32, #tpu.memory_space<vmem>>, %arg1: memref<1x32xf32, #tpu.memory_space<vmem>>, %arg2: memref<1x32xf32, #tpu.memory_space<vmem>>, %arg3: memref<1x32xf32, #tpu.memory_space<vmem>>, %arg4: memref<1x32xf32, #tpu.memory_space<vmem>>, %arg5: memref<96x32xbf16, #tpu.memory_space<vmem>>, %arg6: memref<96x1xf32, #tpu.memory_space<vmem>>, %arg7: memref<32x32xbf16, #tpu.memory_space<vmem>>, %arg8: memref<32x1xf32, #tpu.memory_space<vmem>>, %arg9: memref<32x128xbf16, #tpu.memory_space<vmem>>, %arg10: memref<1x128xf32, #tpu.memory_space<vmem>>, %arg11: memref<128x32xbf16, #tpu.memory_space<vmem>>, %arg12: memref<1x32xf32, #tpu.memory_space<vmem>>, %arg13: memref<8x2x32xf32, #tpu.memory_space<vmem>>, %arg14: memref<2x8x8xf32, #tpu.memory_space<vmem>>) attributes {dimension_semantics = [], scalar_prefetch = 0 : i64, scratch_operands = 0 : i64, tpu.core_type = #tpu.core_type<tc>} {
    %c0 = arith.constant 0 : index
    %c0_0 = arith.constant 0 : index
    %0 = vector.load %arg1[%c0, %c0_0] : memref<1x32xf32, #tpu.memory_space<vmem>>, vector<1x32xf32>
    %c0_1 = arith.constant 0 : index
    %c0_2 = arith.constant 0 : index
    %1 = vector.load %arg2[%c0_1, %c0_2] : memref<1x32xf32, #tpu.memory_space<vmem>>, vector<1x32xf32>
    %c0_3 = arith.constant 0 : index
    %c0_4 = arith.constant 0 : index
    %2 = vector.load %arg3[%c0_3, %c0_4] : memref<1x32xf32, #tpu.memory_space<vmem>>, vector<1x32xf32>
    %c0_5 = arith.constant 0 : index
    %c0_6 = arith.constant 0 : index
    %3 = vector.load %arg4[%c0_5, %c0_6] : memref<1x32xf32, #tpu.memory_space<vmem>>, vector<1x32xf32>
    %c0_7 = arith.constant 0 : index
    %c0_8 = arith.constant 0 : index
    %4 = vector.load %arg5[%c0_7, %c0_8] : memref<96x32xbf16, #tpu.memory_space<vmem>>, vector<96x32xbf16>
    %c0_9 = arith.constant 0 : index
    %c0_10 = arith.constant 0 : index
    %5 = vector.load %arg6[%c0_9, %c0_10] : memref<96x1xf32, #tpu.memory_space<vmem>>, vector<96x1xf32>
    %c0_11 = arith.constant 0 : index
    %c0_12 = arith.constant 0 : index
    %6 = vector.load %arg7[%c0_11, %c0_12] : memref<32x32xbf16, #tpu.memory_space<vmem>>, vector<32x32xbf16>
    %c0_13 = arith.constant 0 : index
    %c0_14 = arith.constant 0 : index
    %7 = vector.load %arg8[%c0_13, %c0_14] : memref<32x1xf32, #tpu.memory_space<vmem>>, vector<32x1xf32>
    %c0_15 = arith.constant 0 : index
    %c0_16 = arith.constant 0 : index
    %8 = vector.load %arg9[%c0_15, %c0_16] : memref<32x128xbf16, #tpu.memory_space<vmem>>, vector<32x128xbf16>
    %c0_17 = arith.constant 0 : index
    %c0_18 = arith.constant 0 : index
    %9 = vector.load %arg10[%c0_17, %c0_18] : memref<1x128xf32, #tpu.memory_space<vmem>>, vector<1x128xf32>
    %c0_19 = arith.constant 0 : index
    %c0_20 = arith.constant 0 : index
    %10 = vector.load %arg11[%c0_19, %c0_20] : memref<128x32xbf16, #tpu.memory_space<vmem>>, vector<128x32xbf16>
    %c0_21 = arith.constant 0 : index
    %c0_22 = arith.constant 0 : index
    %11 = vector.load %arg12[%c0_21, %c0_22] : memref<1x32xf32, #tpu.memory_space<vmem>>, vector<1x32xf32>
    %c0_23 = arith.constant 0 : index
    %c0_24 = arith.constant 0 : index
    %c0_25 = arith.constant 0 : index
    %12 = vector.load %arg0[%c0_23, %c0_24, %c0_25] : memref<8x2x32xf32, #tpu.memory_space<vmem>>, vector<8x1x32xf32>
    %13 = vector.shape_cast %12 : vector<8x1x32xf32> to vector<8x32xf32>
    %cst = arith.constant dense<0.000000e+00> : vector<8xf32>
    %14 = vector.multi_reduction <add>, %13, %cst [1] : vector<8x32xf32> to vector<8xf32>
    %15 = vector.shape_cast %14 : vector<8xf32> to vector<8x1xf32>
    %cst_26 = arith.constant 3.200000e+01 : f32
    %16 = vector.broadcast %cst_26 : f32 to vector<8x1xf32>
    %17 = arith.divf %15, %16 : vector<8x1xf32>
    %18 = vector.broadcast %17 : vector<8x1xf32> to vector<8x32xf32>
    %19 = arith.subf %13, %18 : vector<8x32xf32>
    %20 = arith.mulf %19, %19 : vector<8x32xf32>
    %cst_27 = arith.constant dense<0.000000e+00> : vector<8xf32>
    %21 = vector.multi_reduction <add>, %20, %cst_27 [1] : vector<8x32xf32> to vector<8xf32>
    %22 = vector.shape_cast %21 : vector<8xf32> to vector<8x1xf32>
    %cst_28 = arith.constant 3.200000e+01 : f32
    %23 = vector.broadcast %cst_28 : f32 to vector<8x1xf32>
    %24 = arith.divf %22, %23 : vector<8x1xf32>
    %25 = vector.broadcast %17 : vector<8x1xf32> to vector<8x32xf32>
    %26 = arith.subf %13, %25 : vector<8x32xf32>
    %cst_29 = arith.constant 9.99999974E-6 : f32
    %27 = vector.broadcast %cst_29 : f32 to vector<8x1xf32>
    %28 = arith.addf %24, %27 : vector<8x1xf32>
    %29 = math.rsqrt %28 : vector<8x1xf32>
    %30 = vector.broadcast %29 : vector<8x1xf32> to vector<8x32xf32>
    %31 = arith.mulf %26, %30 : vector<8x32xf32>
    %32 = vector.broadcast %0 : vector<1x32xf32> to vector<8x32xf32>
    %33 = arith.mulf %31, %32 : vector<8x32xf32>
    %34 = vector.broadcast %1 : vector<1x32xf32> to vector<8x32xf32>
    %35 = arith.addf %33, %34 : vector<8x32xf32>
    %36 = tpu.transpose %35, [1, 0] : vector<8x32xf32> -> vector<32x8xf32>
    %37 = arith.truncf %36 : vector<32x8xf32> to vector<32x8xbf16>
    %cst_30 = arith.constant dense<0.000000e+00> : vector<96x8xf32>
    %38 = tpu.matmul %4, %37, %cst_30 {dimension_numbers = #tpu.dot_dimension_numbers<[1], [0], [0], [1], [0, 0, 1, 1], [], []>} : vector<96x32xbf16>, vector<32x8xbf16>, vector<96x8xf32> -> vector<96x8xf32>
    %39 = vector.broadcast %5 : vector<96x1xf32> to vector<96x8xf32>
    %40 = arith.addf %38, %39 : vector<96x8xf32>
    %41 = vector.extract_strided_slice %40 {offsets = [0, 0], sizes = [32, 8], strides = [1, 1]} : vector<96x8xf32> to vector<32x8xf32>
    %42 = vector.shape_cast %41 : vector<32x8xf32> to vector<4x8x8xf32>
    %43 = vector.extract_strided_slice %40 {offsets = [32, 0], sizes = [32, 8], strides = [1, 1]} : vector<96x8xf32> to vector<32x8xf32>
    %44 = vector.shape_cast %43 : vector<32x8xf32> to vector<4x8x8xf32>
    %45 = vector.extract_strided_slice %40 {offsets = [64, 0], sizes = [32, 8], strides = [1, 1]} : vector<96x8xf32> to vector<32x8xf32>
    %46 = vector.shape_cast %45 : vector<32x8xf32> to vector<4x8x8xf32>
    %47 = tpu.transpose %42, [0, 2, 1] : vector<4x8x8xf32> -> vector<4x8x8xf32>
    %cst_31 = arith.constant 0.353553385 : f32
    %48 = vector.broadcast %cst_31 : f32 to vector<4x8x8xf32>
    %49 = arith.mulf %47, %48 : vector<4x8x8xf32>
    "tpu.trace_start"() <{level = 10 : i32, message = "hld,hdm->hlm"}> : () -> ()
    %cst_32 = arith.constant dense<0.000000e+00> : vector<4x8x8xf32>
    %50 = tpu.matmul %49, %44, %cst_32 {dimension_numbers = #tpu.dot_dimension_numbers<[2], [1], [1], [2], [0, 0, 0, 1, 1, 2], [0], [0]>} : vector<4x8x8xf32>, vector<4x8x8xf32>, vector<4x8x8xf32> -> vector<4x8x8xf32>
    "tpu.trace_stop"() : () -> ()
    %cst_33 = arith.constant dense<0xFF800000> : vector<4x8xf32>
    %51 = vector.multi_reduction <maximumf>, %50, %cst_33 [2] : vector<4x8x8xf32> to vector<4x8xf32>
    %52 = vector.shape_cast %51 : vector<4x8xf32> to vector<4x8x1xf32>
    %53 = vector.broadcast %52 : vector<4x8x1xf32> to vector<4x8x8xf32>
    %54 = arith.subf %50, %53 : vector<4x8x8xf32>
    %55 = math.exp %54 : vector<4x8x8xf32>
    %cst_34 = arith.constant dense<0.000000e+00> : vector<4x8xf32>
    %56 = vector.multi_reduction <add>, %55, %cst_34 [2] : vector<4x8x8xf32> to vector<4x8xf32>
    %57 = vector.shape_cast %56 : vector<4x8xf32> to vector<4x8x1xf32>
    %58 = tpu.reciprocal %57 {approx = true} : vector<4x8x1xf32> -> vector<4x8x1xf32>
    %59 = vector.broadcast %58 : vector<4x8x1xf32> to vector<4x8x8xf32>
    %60 = arith.mulf %55, %59 : vector<4x8x8xf32>
    %cst_35 = arith.constant dense<0.000000e+00> : vector<8x8xf32>
    %61 = vector.multi_reduction <add>, %60, %cst_35 [0] : vector<4x8x8xf32> to vector<8x8xf32>
    %cst_36 = arith.constant 4.000000e+00 : f32
    %62 = vector.broadcast %cst_36 : f32 to vector<8x8xf32>
    %63 = arith.divf %61, %62 : vector<8x8xf32>
    %c0_37 = arith.constant 0 : index
    %c0_38 = arith.constant 0 : index
    %c0_39 = arith.constant 0 : index
    %64 = vector.load %arg14[%c0_37, %c0_38, %c0_39] : memref<2x8x8xf32, #tpu.memory_space<vmem>>, vector<1x8x8xf32>
    %65 = vector.shape_cast %64 : vector<1x8x8xf32> to vector<8x8xf32>
    %66 = vector.shape_cast %63 : vector<8x8xf32> to vector<1x8x8xf32>
    tpu.vector_store %arg14[%c0_37, %c0_38, %c0_39], %66 {strides = array<i32>} : memref<2x8x8xf32, #tpu.memory_space<vmem>>, vector<1x8x8xf32>,
    "tpu.trace_start"() <{level = 10 : i32, message = "hdm,hlm->hdl"}> : () -> ()
    %cst_40 = arith.constant dense<0.000000e+00> : vector<4x8x8xf32>
    %67 = tpu.matmul %46, %60, %cst_40 {dimension_numbers = #tpu.dot_dimension_numbers<[2], [2], [1], [1], [0, 0, 0, 1, 1, 1], [0], [0]>} : vector<4x8x8xf32>, vector<4x8x8xf32>, vector<4x8x8xf32> -> vector<4x8x8xf32>
    "tpu.trace_stop"() : () -> ()
    %68 = vector.shape_cast %67 : vector<4x8x8xf32> to vector<32x8xf32>
    %69 = arith.truncf %68 : vector<32x8xf32> to vector<32x8xbf16>
    %cst_41 = arith.constant dense<0.000000e+00> : vector<32x8xf32>
    %70 = tpu.matmul %6, %69, %cst_41 {dimension_numbers = #tpu.dot_dimension_numbers<[1], [0], [0], [1], [0, 0, 1, 1], [], []>} : vector<32x32xbf16>, vector<32x8xbf16>, vector<32x8xf32> -> vector<32x8xf32>
    %71 = vector.broadcast %7 : vector<32x1xf32> to vector<32x8xf32>
    %72 = arith.addf %70, %71 : vector<32x8xf32>
    %73 = tpu.transpose %72, [1, 0] : vector<32x8xf32> -> vector<8x32xf32>
    %74 = arith.addf %13, %73 : vector<8x32xf32>
    %cst_42 = arith.constant dense<0.000000e+00> : vector<8xf32>
    %75 = vector.multi_reduction <add>, %74, %cst_42 [1] : vector<8x32xf32> to vector<8xf32>
    %76 = vector.shape_cast %75 : vector<8xf32> to vector<8x1xf32>
    %cst_43 = arith.constant 3.200000e+01 : f32
    %77 = vector.broadcast %cst_43 : f32 to vector<8x1xf32>
    %78 = arith.divf %76, %77 : vector<8x1xf32>
    %79 = vector.broadcast %78 : vector<8x1xf32> to vector<8x32xf32>
    %80 = arith.subf %74, %79 : vector<8x32xf32>
    %81 = arith.mulf %80, %80 : vector<8x32xf32>
    %cst_44 = arith.constant dense<0.000000e+00> : vector<8xf32>
    %82 = vector.multi_reduction <add>, %81, %cst_44 [1] : vector<8x32xf32> to vector<8xf32>
    %83 = vector.shape_cast %82 : vector<8xf32> to vector<8x1xf32>
    %cst_45 = arith.constant 3.200000e+01 : f32
    %84 = vector.broadcast %cst_45 : f32 to vector<8x1xf32>
    %85 = arith.divf %83, %84 : vector<8x1xf32>
    %86 = vector.broadcast %78 : vector<8x1xf32> to vector<8x32xf32>
    %87 = arith.subf %74, %86 : vector<8x32xf32>
    %cst_46 = arith.constant 9.99999974E-6 : f32
    %88 = vector.broadcast %cst_46 : f32 to vector<8x1xf32>
    %89 = arith.addf %85, %88 : vector<8x1xf32>
    %90 = math.rsqrt %89 : vector<8x1xf32>
    %91 = vector.broadcast %90 : vector<8x1xf32> to vector<8x32xf32>
    %92 = arith.mulf %87, %91 : vector<8x32xf32>
    %93 = vector.broadcast %2 : vector<1x32xf32> to vector<8x32xf32>
    %94 = arith.mulf %92, %93 : vector<8x32xf32>
    %95 = vector.broadcast %3 : vector<1x32xf32> to vector<8x32xf32>
    %96 = arith.addf %94, %95 : vector<8x32xf32>
    %97 = arith.truncf %96 : vector<8x32xf32> to vector<8x32xbf16>
    %cst_47 = arith.constant dense<0.000000e+00> : vector<8x128xf32>
    %98 = tpu.matmul %97, %8, %cst_47 {dimension_numbers = #tpu.dot_dimension_numbers<[1], [0], [0], [1], [0, 0, 1, 1], [], []>} : vector<8x32xbf16>, vector<32x128xbf16>, vector<8x128xf32> -> vector<8x128xf32>
    %99 = vector.broadcast %9 : vector<1x128xf32> to vector<8x128xf32>
    %100 = arith.addf %98, %99 : vector<8x128xf32>
    %cst_48 = arith.constant 1.702000e+00 : f32
    %101 = vector.broadcast %cst_48 : f32 to vector<8x128xf32>
    %102 = arith.mulf %101, %100 : vector<8x128xf32>
    %103 = arith.negf %102 : vector<8x128xf32>
    %104 = math.exp %103 : vector<8x128xf32>
    %cst_49 = arith.constant 1.000000e+00 : f32
    %105 = vector.broadcast %cst_49 : f32 to vector<8x128xf32>
    %106 = arith.addf %105, %104 : vector<8x128xf32>
    %107 = arith.divf %105, %106 : vector<8x128xf32>
    %108 = arith.mulf %100, %107 : vector<8x128xf32>
    %109 = arith.truncf %108 : vector<8x128xf32> to vector<8x128xbf16>
    %cst_50 = arith.constant dense<0.000000e+00> : vector<8x32xf32>
    %110 = tpu.matmul %109, %10, %cst_50 {dimension_numbers = #tpu.dot_dimension_numbers<[1], [0], [0], [1], [0, 0, 1, 1], [], []>} : vector<8x128xbf16>, vector<128x32xbf16>, vector<8x32xf32> -> vector<8x32xf32>
    %111 = vector.broadcast %11 : vector<1x32xf32> to vector<8x32xf32>
    %112 = arith.addf %110, %111 : vector<8x32xf32>
    %113 = arith.addf %74, %112 : vector<8x32xf32>
    %c0_51 = arith.constant 0 : index
    %c0_52 = arith.constant 0 : index
    %c0_53 = arith.constant 0 : index
    %114 = vector.load %arg13[%c0_51, %c0_52, %c0_53] : memref<8x2x32xf32, #tpu.memory_space<vmem>>, vector<8x1x32xf32>
    %115 = vector.shape_cast %114 : vector<8x1x32xf32> to vector<8x32xf32>
    %116 = vector.shape_cast %113 : vector<8x32xf32> to vector<8x1x32xf32>
    tpu.vector_store %arg13[%c0_51, %c0_52, %c0_53], %116 {strides = array<i32>} : memref<8x2x32xf32, #tpu.memory_space<vmem>>, vector<8x1x32xf32>,
    %c0_54 = arith.constant 0 : index
    %c1 = arith.constant 1 : index
    %c0_55 = arith.constant 0 : index
    %117 = vector.load %arg0[%c0_54, %c1, %c0_55] : memref<8x2x32xf32, #tpu.memory_space<vmem>>, vector<8x1x32xf32>
    %118 = vector.shape_cast %117 : vector<8x1x32xf32> to vector<8x32xf32>
    %cst_56 = arith.constant dense<0.000000e+00> : vector<8xf32>
    %119 = vector.multi_reduction <add>, %118, %cst_56 [1] : vector<8x32xf32> to vector<8xf32>
    %120 = vector.shape_cast %119 : vector<8xf32> to vector<8x1xf32>
    %cst_57 = arith.constant 3.200000e+01 : f32
    %121 = vector.broadcast %cst_57 : f32 to vector<8x1xf32>
    %122 = arith.divf %120, %121 : vector<8x1xf32>
    %123 = vector.broadcast %122 : vector<8x1xf32> to vector<8x32xf32>
    %124 = arith.subf %118, %123 : vector<8x32xf32>
    %125 = arith.mulf %124, %124 : vector<8x32xf32>
    %cst_58 = arith.constant dense<0.000000e+00> : vector<8xf32>
    %126 = vector.multi_reduction <add>, %125, %cst_58 [1] : vector<8x32xf32> to vector<8xf32>
    %127 = vector.shape_cast %126 : vector<8xf32> to vector<8x1xf32>
    %cst_59 = arith.constant 3.200000e+01 : f32
    %128 = vector.broadcast %cst_59 : f32 to vector<8x1xf32>
    %129 = arith.divf %127, %128 : vector<8x1xf32>
    %130 = vector.broadcast %122 : vector<8x1xf32> to vector<8x32xf32>
    %131 = arith.subf %118, %130 : vector<8x32xf32>
    %cst_60 = arith.constant 9.99999974E-6 : f32
    %132 = vector.broadcast %cst_60 : f32 to vector<8x1xf32>
    %133 = arith.addf %129, %132 : vector<8x1xf32>
    %134 = math.rsqrt %133 : vector<8x1xf32>
    %135 = vector.broadcast %134 : vector<8x1xf32> to vector<8x32xf32>
    %136 = arith.mulf %131, %135 : vector<8x32xf32>
    %137 = vector.broadcast %0 : vector<1x32xf32> to vector<8x32xf32>
    %138 = arith.mulf %136, %137 : vector<8x32xf32>
    %139 = vector.broadcast %1 : vector<1x32xf32> to vector<8x32xf32>
    %140 = arith.addf %138, %139 : vector<8x32xf32>
    %141 = tpu.transpose %140, [1, 0] : vector<8x32xf32> -> vector<32x8xf32>
    %142 = arith.truncf %141 : vector<32x8xf32> to vector<32x8xbf16>
    %cst_61 = arith.constant dense<0.000000e+00> : vector<96x8xf32>
    %143 = tpu.matmul %4, %142, %cst_61 {dimension_numbers = #tpu.dot_dimension_numbers<[1], [0], [0], [1], [0, 0, 1, 1], [], []>} : vector<96x32xbf16>, vector<32x8xbf16>, vector<96x8xf32> -> vector<96x8xf32>
    %144 = vector.broadcast %5 : vector<96x1xf32> to vector<96x8xf32>
    %145 = arith.addf %143, %144 : vector<96x8xf32>
    %146 = vector.extract_strided_slice %145 {offsets = [0, 0], sizes = [32, 8], strides = [1, 1]} : vector<96x8xf32> to vector<32x8xf32>
    %147 = vector.shape_cast %146 : vector<32x8xf32> to vector<4x8x8xf32>
    %148 = vector.extract_strided_slice %145 {offsets = [32, 0], sizes = [32, 8], strides = [1, 1]} : vector<96x8xf32> to vector<32x8xf32>
    %149 = vector.shape_cast %148 : vector<32x8xf32> to vector<4x8x8xf32>
    %150 = vector.extract_strided_slice %145 {offsets = [64, 0], sizes = [32, 8], strides = [1, 1]} : vector<96x8xf32> to vector<32x8xf32>
    %151 = vector.shape_cast %150 : vector<32x8xf32> to vector<4x8x8xf32>
    %152 = tpu.transpose %147, [0, 2, 1] : vector<4x8x8xf32> -> vector<4x8x8xf32>
    %cst_62 = arith.constant 0.353553385 : f32
    %153 = vector.broadcast %cst_62 : f32 to vector<4x8x8xf32>
    %154 = arith.mulf %152, %153 : vector<4x8x8xf32>
    "tpu.trace_start"() <{level = 10 : i32, message = "hld,hdm->hlm"}> : () -> ()
    %cst_63 = arith.constant dense<0.000000e+00> : vector<4x8x8xf32>
    %155 = tpu.matmul %154, %149, %cst_63 {dimension_numbers = #tpu.dot_dimension_numbers<[2], [1], [1], [2], [0, 0, 0, 1, 1, 2], [0], [0]>} : vector<4x8x8xf32>, vector<4x8x8xf32>, vector<4x8x8xf32> -> vector<4x8x8xf32>
    "tpu.trace_stop"() : () -> ()
    %cst_64 = arith.constant dense<0xFF800000> : vector<4x8xf32>
    %156 = vector.multi_reduction <maximumf>, %155, %cst_64 [2] : vector<4x8x8xf32> to vector<4x8xf32>
    %157 = vector.shape_cast %156 : vector<4x8xf32> to vector<4x8x1xf32>
    %158 = vector.broadcast %157 : vector<4x8x1xf32> to vector<4x8x8xf32>
    %159 = arith.subf %155, %158 : vector<4x8x8xf32>
    %160 = math.exp %159 : vector<4x8x8xf32>
    %cst_65 = arith.constant dense<0.000000e+00> : vector<4x8xf32>
    %161 = vector.multi_reduction <add>, %160, %cst_65 [2] : vector<4x8x8xf32> to vector<4x8xf32>
    %162 = vector.shape_cast %161 : vector<4x8xf32> to vector<4x8x1xf32>
    %163 = tpu.reciprocal %162 {approx = true} : vector<4x8x1xf32> -> vector<4x8x1xf32>
    %164 = vector.broadcast %163 : vector<4x8x1xf32> to vector<4x8x8xf32>
    %165 = arith.mulf %160, %164 : vector<4x8x8xf32>
    %cst_66 = arith.constant dense<0.000000e+00> : vector<8x8xf32>
    %166 = vector.multi_reduction <add>, %165, %cst_66 [0] : vector<4x8x8xf32> to vector<8x8xf32>
    %cst_67 = arith.constant 4.000000e+00 : f32
    %167 = vector.broadcast %cst_67 : f32 to vector<8x8xf32>
    %168 = arith.divf %166, %167 : vector<8x8xf32>
    %c1_68 = arith.constant 1 : index
    %c0_69 = arith.constant 0 : index
    %c0_70 = arith.constant 0 : index
    %169 = vector.load %arg14[%c1_68, %c0_69, %c0_70] : memref<2x8x8xf32, #tpu.memory_space<vmem>>, vector<1x8x8xf32>
    %170 = vector.shape_cast %169 : vector<1x8x8xf32> to vector<8x8xf32>
    %171 = vector.shape_cast %168 : vector<8x8xf32> to vector<1x8x8xf32>
    tpu.vector_store %arg14[%c1_68, %c0_69, %c0_70], %171 {strides = array<i32>} : memref<2x8x8xf32, #tpu.memory_space<vmem>>, vector<1x8x8xf32>,
    "tpu.trace_start"() <{level = 10 : i32, message = "hdm,hlm->hdl"}> : () -> ()
    %cst_71 = arith.constant dense<0.000000e+00> : vector<4x8x8xf32>
    %172 = tpu.matmul %151, %165, %cst_71 {dimension_numbers = #tpu.dot_dimension_numbers<[2], [2], [1], [1], [0, 0, 0, 1, 1, 1], [0], [0]>} : vector<4x8x8xf32>, vector<4x8x8xf32>, vector<4x8x8xf32> -> vector<4x8x8xf32>
    "tpu.trace_stop"() : () -> ()
    %173 = vector.shape_cast %172 : vector<4x8x8xf32> to vector<32x8xf32>
    %174 = arith.truncf %173 : vector<32x8xf32> to vector<32x8xbf16>
    %cst_72 = arith.constant dense<0.000000e+00> : vector<32x8xf32>
    %175 = tpu.matmul %6, %174, %cst_72 {dimension_numbers = #tpu.dot_dimension_numbers<[1], [0], [0], [1], [0, 0, 1, 1], [], []>} : vector<32x32xbf16>, vector<32x8xbf16>, vector<32x8xf32> -> vector<32x8xf32>
    %176 = vector.broadcast %7 : vector<32x1xf32> to vector<32x8xf32>
    %177 = arith.addf %175, %176 : vector<32x8xf32>
    %178 = tpu.transpose %177, [1, 0] : vector<32x8xf32> -> vector<8x32xf32>
    %179 = arith.addf %118, %178 : vector<8x32xf32>
    %cst_73 = arith.constant dense<0.000000e+00> : vector<8xf32>
    %180 = vector.multi_reduction <add>, %179, %cst_73 [1] : vector<8x32xf32> to vector<8xf32>
    %181 = vector.shape_cast %180 : vector<8xf32> to vector<8x1xf32>
    %cst_74 = arith.constant 3.200000e+01 : f32
    %182 = vector.broadcast %cst_74 : f32 to vector<8x1xf32>
    %183 = arith.divf %181, %182 : vector<8x1xf32>
    %184 = vector.broadcast %183 : vector<8x1xf32> to vector<8x32xf32>
    %185 = arith.subf %179, %184 : vector<8x32xf32>
    %186 = arith.mulf %185, %185 : vector<8x32xf32>
    %cst_75 = arith.constant dense<0.000000e+00> : vector<8xf32>
    %187 = vector.multi_reduction <add>, %186, %cst_75 [1] : vector<8x32xf32> to vector<8xf32>
    %188 = vector.shape_cast %187 : vector<8xf32> to vector<8x1xf32>
    %cst_76 = arith.constant 3.200000e+01 : f32
    %189 = vector.broadcast %cst_76 : f32 to vector<8x1xf32>
    %190 = arith.divf %188, %189 : vector<8x1xf32>
    %191 = vector.broadcast %183 : vector<8x1xf32> to vector<8x32xf32>
    %192 = arith.subf %179, %191 : vector<8x32xf32>
    %cst_77 = arith.constant 9.99999974E-6 : f32
    %193 = vector.broadcast %cst_77 : f32 to vector<8x1xf32>
    %194 = arith.addf %190, %193 : vector<8x1xf32>
    %195 = math.rsqrt %194 : vector<8x1xf32>
    %196 = vector.broadcast %195 : vector<8x1xf32> to vector<8x32xf32>
    %197 = arith.mulf %192, %196 : vector<8x32xf32>
    %198 = vector.broadcast %2 : vector<1x32xf32> to vector<8x32xf32>
    %199 = arith.mulf %197, %198 : vector<8x32xf32>
    %200 = vector.broadcast %3 : vector<1x32xf32> to vector<8x32xf32>
    %201 = arith.addf %199, %200 : vector<8x32xf32>
    %202 = arith.truncf %201 : vector<8x32xf32> to vector<8x32xbf16>
    %cst_78 = arith.constant dense<0.000000e+00> : vector<8x128xf32>
    %203 = tpu.matmul %202, %8, %cst_78 {dimension_numbers = #tpu.dot_dimension_numbers<[1], [0], [0], [1], [0, 0, 1, 1], [], []>} : vector<8x32xbf16>, vector<32x128xbf16>, vector<8x128xf32> -> vector<8x128xf32>
    %204 = vector.broadcast %9 : vector<1x128xf32> to vector<8x128xf32>
    %205 = arith.addf %203, %204 : vector<8x128xf32>
    %cst_79 = arith.constant 1.702000e+00 : f32
    %206 = vector.broadcast %cst_79 : f32 to vector<8x128xf32>
    %207 = arith.mulf %206, %205 : vector<8x128xf32>
    %208 = arith.negf %207 : vector<8x128xf32>
    %209 = math.exp %208 : vector<8x128xf32>
    %cst_80 = arith.constant 1.000000e+00 : f32
    %210 = vector.broadcast %cst_80 : f32 to vector<8x128xf32>
    %211 = arith.addf %210, %209 : vector<8x128xf32>
    %212 = arith.divf %210, %211 : vector<8x128xf32>
    %213 = arith.mulf %205, %212 : vector<8x128xf32>
    %214 = arith.truncf %213 : vector<8x128xf32> to vector<8x128xbf16>
    %cst_81 = arith.constant dense<0.000000e+00> : vector<8x32xf32>
    %215 = tpu.matmul %214, %10, %cst_81 {dimension_numbers = #tpu.dot_dimension_numbers<[1], [0], [0], [1], [0, 0, 1, 1], [], []>} : vector<8x128xbf16>, vector<128x32xbf16>, vector<8x32xf32> -> vector<8x32xf32>
    %216 = vector.broadcast %11 : vector<1x32xf32> to vector<8x32xf32>
    %217 = arith.addf %215, %216 : vector<8x32xf32>
    %218 = arith.addf %179, %217 : vector<8x32xf32>
    %c0_82 = arith.constant 0 : index
    %c1_83 = arith.constant 1 : index
    %c0_84 = arith.constant 0 : index
    %219 = vector.load %arg13[%c0_82, %c1_83, %c0_84] : memref<8x2x32xf32, #tpu.memory_space<vmem>>, vector<8x1x32xf32>
    %220 = vector.shape_cast %219 : vector<8x1x32xf32> to vector<8x32xf32>
    %221 = vector.shape_cast %218 : vector<8x32xf32> to vector<8x1x32xf32>
    tpu.vector_store %arg13[%c0_82, %c1_83, %c0_84], %221 {strides = array<i32>} : memref<8x2x32xf32, #tpu.memory_space<vmem>>, vector<8x1x32xf32>,
    return
  }
}

</mosaic_0001>

<bundles_post_ra>
// kernel: tpu_custom_call.1
= control target key start
LH: loop header
LB: loop body
LE: loop exit
PB: predicated region body
PF: predicated region fallthrough
CT: control target
= control target key end

     0   :  { %20 = vsyncpa [#allocation3], 0  ;;  %vm124_vm0 = vcmask 1041409   ;;  %vm127_vm1 = vcmask 1042434   ;;  %vm130_vm2 = vcmask 1043459   ;;  %vm133_vm3 = vcmask 1044484   ;;  %s3468_s0 = inlined_call_operand.vmem [shape: f32[8,2,32], index: 0, kind: input, shape index: {}]   ;;  %s3469_s1 = inlined_call_operand.vmem [shape: f32[1,32], index: 1, kind: input, shape index: {}]   ;;  %s3470_s2 = inlined_call_operand.vmem [shape: f32[1,32], index: 2, kind: input, shape index: {}]   ;;  %s3471_s3 = inlined_call_operand.vmem [shape: f32[1,32], index: 3, kind: input, shape index: {}]   ;;  %s3472_s4 = inlined_call_operand.vmem [shape: f32[1,32], index: 4, kind: input, shape index: {}]   ;;  %s3473_s5 = inlined_call_operand.vmem [shape: bf16[96,32], index: 5, kind: input, shape index: {}]   ;;  %s3474_s6 = inlined_call_operand.vmem [shape: f32[96,1], index: 6, kind: input, shape index: {}]   ;;  %s3475_s7 = inlined_call_operand.vmem [shape: bf16[32,32], index: 7, kind: input, shape index: {}]   ;;  %s3476_s8 = inlined_call_operand.vmem [shape: f32[32,1], index: 8, kind: input, shape index: {}]   ;;  %s3477_s9 = inlined_call_operand.vmem [shape: bf16[32,128], index: 9, kind: input, shape index: {}]   ;;  %s3478_s10 = inlined_call_operand.vmem [shape: f32[1,128], index: 10, kind: input, shape index: {}]   ;;  %s3479_s11 = inlined_call_operand.vmem [shape: bf16[128,32], index: 11, kind: input, shape index: {}]   ;;  %s3480_s12 = inlined_call_operand.vmem [shape: f32[1,32], index: 12, kind: input, shape index: {}]   ;;  %s3481_s13 = inlined_call_operand.hbm [shape: f32[8,2,32], index: 13, kind: output, shape index: {0}]   ;;  %s3482_s14 = inlined_call_operand.hbm [shape: f32[2,8,8], index: 14, kind: output, shape index: {1}]  }
   0x1   :  { %v107_v0 = vld [vmem:[%s3468_s0] sm:$0x1]  ;;  %v108_v1 = vld [vmem:[%s3468_s0 + $0x2] sm:$0x1]  ;;  %v109_v2 = vld [vmem:[%s3468_s0 + $0x4] sm:$0x1] }
   0x2   :  { %v110_v3 = vld [vmem:[%s3468_s0 + $0x6] sm:$0x1]  ;;  %v111_v4 = vld [vmem:[%s3468_s0 + $0x8] sm:$0x1]  ;;  %v112_v5 = vld [vmem:[%s3468_s0 + $0xa] sm:$0x1] }
   0x3   :  { %v113_v6 = vld [vmem:[%s3468_s0 + $0xc] sm:$0x1]  ;;  %v114_v7 = vld [vmem:[%s3468_s0 + $0xe] sm:$0x1]  ;;  %v123_v8 = vrot.slane %v108_v1, 7  ;;  %v126_v9 = vrot.slane %v109_v2, 6 }
   0x4   :  { %v129_v10 = vrot.slane %v110_v3, 5  ;;  %v132_v12 = vrot.slane %v111_v4, 4  ;;  %v135_v13 = vrot.slane %v112_v5, 3  ;;  %vm136_vm4 = vcmask 1045509  }
   0x5   :  { %v125_v11 = vsel %vm124_vm0, %v123_v8, %v107_v0  ;;  %v138_v15 = vrot.slane %v113_v6, 2  ;;  %vm139_vm5 = vcmask 1046534   ;;  %v141_v17 = vrot.slane %v114_v7, 1 }
   0x6   :  { %v128_v14 = vsel %vm127_vm1, %v126_v9, %v125_v11  ;;  %vm142_vm6 = vcmask 1047559   ;;  %vm145_vm7 = vcmask 261120  }
   0x7   :  { %v131_v16 = vsel %vm130_vm2, %v129_v10, %v128_v14 }
   0x8   :  { %v134_v18 = vsel %vm133_vm3, %v132_v12, %v131_v16 }
   0x9   :  { %v137_v19 = vsel %vm136_vm4, %v135_v13, %v134_v18 }
   0xa   :  { %21 = vsyncpa [#allocation5], 0  ;;  %v140_v20 = vsel %vm139_vm5, %v138_v15, %v137_v19  ;;  %v2579_v23 = vmov 32.0   ;;  %v2710_v16 = vld [vmem:[%s3469_s1] ss:$0 sm:$0xff]  ;;  %vm609_vm12 = vcmask 64512  }
   0xb   :  { %v143_v21 = vsel %vm142_vm6, %v141_v17, %v140_v20  ;;  %2459 = vrcp.f32 %v2579_v23  ;;  %s2289_s29 = sshll.u32 %s3482_s14, 4  ;;  %s2584_s30 = smov 8   ;;  %s2290_s29 = int_to_ptr.hbm [resolvable:$true] %s2289_s29 }
   0xc   :  { %v146_v22 = vsel %vm145_vm7, %v143_v21, 0.0  ;;  %s2585_s14 = smov [#allocation2]  }
   0xd   :  { %147 = vadd.xlane.f32.xlu0 %v146_v22  ;;  %s2274_s1 = sshll.u32 %s2585_s14, 4  ;;  %s2275_s1 = int_to_ptr.vmem [resolvable:$true] %s2274_s1 }
  0x11   :  { %v2460_v24 = vpop.eup %2459 }
  0x12   :  { %v150_v25 = vmul.f32 32.0, %v2460_v24  ;;  %vm154_vm8 = vweird.f32 %v2460_v24 }
  0x14   :  { %v151_v26 = vsub.f32 1.0, %v150_v25 }
  0x16   :  { %v152_v27 = vmul.f32 %v2460_v24, %v151_v26 }
  0x18   :  { %v153_v28 = vadd.f32 %v2460_v24, %v152_v27 }
  0x1a   :  { %v2695_v29 = vsel %vm154_vm8, %v2460_v24, %v153_v28 }
  0x80   :  { %v148_v30 = vpop.xlane.xlu0 %147 }
  0x81   :  { %v156_v31 = vmul.f32 %v2695_v29, %v148_v30 }
  0x83   :  { %v158_v32 = vrot.slane %v156_v31, 1  ;;  %v159_v33 = vrot.slane %v156_v31, 2  ;;  %v160_v34 = vrot.slane %v156_v31, 3  ;;  %v161_v35 = vrot.slane %v156_v31, 4 }
  0x84   :  { %v162_v36 = vrot.slane %v156_v31, 5  ;;  %v163_v37 = vrot.slane %v156_v31, 6  ;;  %v164_v38 = vrot.slane %v156_v31, 7  ;;  %v173_v39 = vsub.f32 %v107_v0, %v156_v31 }
  0x85   :  { %v174_v40 = vsub.f32 %v108_v1, %v158_v32  ;;  %v175_v41 = vsub.f32 %v109_v2, %v159_v33  ;;  %v176_v42 = vsub.f32 %v110_v3, %v160_v34  ;;  %v177_v43 = vsub.f32 %v111_v4, %v161_v35 }
  0x86   :  { %v178_v44 = vsub.f32 %v112_v5, %v162_v36  ;;  %v179_v45 = vsub.f32 %v113_v6, %v163_v37  ;;  %v180_v46 = vsub.f32 %v114_v7, %v164_v38  ;;  %v181_v51 = vmul.f32 %v173_v39, %v173_v39  ;;  %v2720_v38 = vld [vmem:[%s3470_s2] ss:$0 sm:$0xff] }
  0x87   :  { %v182_v47 = vmul.f32 %v174_v40, %v174_v40  ;;  %v183_v48 = vmul.f32 %v175_v41, %v175_v41  ;;  %v184_v49 = vmul.f32 %v176_v42, %v176_v42  ;;  %v185_v50 = vmul.f32 %v177_v43, %v177_v43 }
  0x88   :  { %v186_v52 = vmul.f32 %v178_v44, %v178_v44  ;;  %v187_v55 = vmul.f32 %v179_v45, %v179_v45  ;;  %v188_v56 = vmul.f32 %v180_v46, %v180_v46 }
  0x89   :  { %v197_v53 = vrot.slane %v182_v47, 7  ;;  %v199_v54 = vrot.slane %v183_v48, 6  ;;  %v201_v58 = vrot.slane %v184_v49, 5  ;;  %v203_v60 = vrot.slane %v185_v50, 4 }
  0x8a   :  { %v205_v62 = vrot.slane %v186_v52, 3  ;;  %v207_v0 = vrot.slane %v187_v55, 2  ;;  %v209_v2 = vrot.slane %v188_v56, 1 }
  0x8b   :  { %v198_v57 = vsel %vm124_vm0, %v197_v53, %v181_v51 }
  0x8c   :  { %v200_v59 = vsel %vm127_vm1, %v199_v54, %v198_v57 }
  0x8d   :  { %v202_v61 = vsel %vm130_vm2, %v201_v58, %v200_v59 }
  0x8e   :  { %v204_v63 = vsel %vm133_vm3, %v203_v60, %v202_v61 }
  0x8f   :  { %v206_v1 = vsel %vm136_vm4, %v205_v62, %v204_v63 }
  0x90   :  { %v208_v3 = vsel %vm139_vm5, %v207_v0, %v206_v1  ;;  %v66_v1 = vld [vmem:[%s3474_s6 + $0x8] sm:$0xff] }
  0x91   :  { %v210_v4 = vsel %vm142_vm6, %v209_v2, %v208_v3  ;;  %v65_v2 = vld [vmem:[%s3474_s6] sm:$0xff]  ;;  %v2580_v3 = vmov 0  }
  0x92   :  { %v212_v5 = vsel %vm145_vm7, %v210_v4, 0.0  ;;  %2451 = vset.pattern.permute.xlu2 %v2580_v3  ;;  %2452 = vset.pattern.permute.xlu0 %v2580_v3 }
  0x93   :  { %213 = vadd.xlane.f32.xlu0 %v212_v5  ;;  %337 = vperm.xlu2 %2451, %v66_v1  }
 0x106   :  { %v214_v6 = vpop.xlane.xlu0 %213 }
 0x107   :  { %v215_v7 = vmul.f32 %v214_v6, %v2695_v29  ;;  %v67_v6 = vld [vmem:[%s3474_s6 + $0x10] sm:$0xff] }
 0x108   :  { %342 = vperm.xlu2 %2451, %v67_v6  }
 0x109   :  { %v216_v8 = vadd.f32 1e-05, %v215_v7 }
 0x10b   :  { %2461 = vrsqrt.f32 %v216_v8  ;;  %vm223_vm10 = vweird.f32 %v216_v8 }
 0x111   :  { %v2462_v9 = vpop.eup %2461 }
 0x112   :  { %v218_v10 = vmul.f32 %v2462_v9, %v216_v8  ;;  %vm224_vm9 = vweird.f32 %v2462_v9  ;;  %v69_v8 = vld [vmem:[%s3474_s6 + $0x20] sm:$0xff] }
 0x113   :  { %vm225_vm11 = vmor %vm223_vm10, %vm224_vm9  ;;  %352 = vperm.xlu2 %2451, %v69_v8  }
 0x114   :  { %v219_v11 = vmul.f32 %v2462_v9, %v218_v10 }
 0x116   :  { %v220_v12 = vmul.f32 0.5, %v219_v11  ;;  %v2755_v11 = vld [vmem:[%s3473_s5] sm:$0xff] }
 0x118   :  { %v221_v13 = vsub.f32 1.5, %v220_v12  ;;  %v68_v12 = vld [vmem:[%s3474_s6 + $0x18] sm:$0xff] }
 0x119   :  { %347 = vperm.xlu0 %2452, %v68_v12  }
 0x11a   :  { %v222_v14 = vmul.f32 %v2462_v9, %v221_v13  ;;  %v70_v13 = vld [vmem:[%s3474_s6 + $0x28] sm:$0xff] }
 0x11b   :  { %357 = vperm.xlu2 %2451, %v70_v13  }
 0x11c   :  { %v226_v15 = vsel %vm225_vm11, %v2462_v9, %v222_v14  ;;  %v71_v14 = vld [vmem:[%s3474_s6 + $0x30] sm:$0xff] }
 0x11d   :  { %v228_v17 = vrot.slane %v226_v15, 1  ;;  %v229_v18 = vrot.slane %v226_v15, 2  ;;  %v230_v19 = vrot.slane %v226_v15, 3  ;;  %v231_v20 = vrot.slane %v226_v15, 4 }
 0x11e   :  { %v232_v21 = vrot.slane %v226_v15, 5  ;;  %v233_v22 = vrot.slane %v226_v15, 6  ;;  %v234_v23 = vrot.slane %v226_v15, 7  ;;  %v243_v24 = vmul.f32 %v226_v15, %v173_v39  ;;  %v2771_v15 = vld [vmem:[%s3473_s5 + $0x8] sm:$0xff] }
 0x11f   :  { %v244_v25 = vmul.f32 %v228_v17, %v174_v40  ;;  %v245_v26 = vmul.f32 %v229_v18, %v175_v41  ;;  %v246_v27 = vmul.f32 %v230_v19, %v176_v42  ;;  %v247_v28 = vmul.f32 %v231_v20, %v177_v43  ;;  %v72_v17 = vld [vmem:[%s3474_s6 + $0x38] sm:$0xff]  ;;  %v2781_v18 = vld [vmem:[%s3473_s5 + $0x10] sm:$0xff] }
 0x120   :  { %v248_v30 = vmul.f32 %v232_v21, %v178_v44  ;;  %v249_v31 = vmul.f32 %v233_v22, %v179_v45  ;;  %v250_v32 = vmul.f32 %v234_v23, %v180_v46  ;;  %v254_v33 = vmul.f32 %v2710_v16, %v243_v24  ;;  %v2788_v19 = vld [vmem:[%s3473_s5 + $0x18] sm:$0xff]  ;;  %v2795_v23 = vpop.permute.xlu2 %337 }
 0x121   :  { %v255_v34 = vmul.f32 %v2710_v16, %v244_v25  ;;  %v256_v35 = vmul.f32 %v2710_v16, %v245_v26  ;;  %v257_v36 = vmul.f32 %v2710_v16, %v246_v27  ;;  %v258_v37 = vmul.f32 %v2710_v16, %v247_v28 }
 0x122   :  { %v259_v39 = vmul.f32 %v2710_v16, %v248_v30  ;;  %v260_v40 = vmul.f32 %v2710_v16, %v249_v31  ;;  %v261_v41 = vmul.f32 %v2710_v16, %v250_v32  ;;  %v265_v46 = vadd.f32 %v2720_v38, %v254_v33 }
 0x123   :  { %v266_v42 = vadd.f32 %v2720_v38, %v255_v34  ;;  %v267_v43 = vadd.f32 %v2720_v38, %v256_v35  ;;  %v268_v44 = vadd.f32 %v2720_v38, %v257_v36  ;;  %v269_v45 = vadd.f32 %v2720_v38, %v258_v37  ;;  %362 = vperm.xlu2 %2451, %v71_v14  }
 0x124   :  { %v270_v47 = vadd.f32 %v2720_v38, %v259_v39  ;;  %v271_v50 = vadd.f32 %v2720_v38, %v260_v40  ;;  %v272_v51 = vadd.f32 %v2720_v38, %v261_v41 }
 0x125   :  { %v281_v48 = vrot.slane %v266_v42, 7  ;;  %v283_v49 = vrot.slane %v267_v43, 6  ;;  %v285_v53 = vrot.slane %v268_v44, 5  ;;  %v287_v55 = vrot.slane %v269_v45, 4 }
 0x126   :  { %v289_v57 = vrot.slane %v270_v47, 3  ;;  %v291_v59 = vrot.slane %v271_v50, 2  ;;  %v293_v61 = vrot.slane %v272_v51, 1 }
 0x127   :  { %v282_v52 = vsel %vm124_vm0, %v281_v48, %v265_v46 }
 0x128   :  { %v284_v54 = vsel %vm127_vm1, %v283_v49, %v282_v52 }
 0x129   :  { %v286_v56 = vsel %vm130_vm2, %v285_v53, %v284_v54 }
 0x12a   :  { %v288_v58 = vsel %vm133_vm3, %v287_v55, %v286_v56  ;;  %v2824_v56 = vld [vmem:[%s3473_s5 + $0x20] sm:$0xff] }
 0x12b   :  { %v290_v60 = vsel %vm136_vm4, %v289_v57, %v288_v58  ;;  %367 = vperm.xlu2 %2451, %v72_v17  }
 0x12c   :  { %v292_v62 = vsel %vm139_vm5, %v291_v59, %v290_v60 }
 0x12d   :  { %v294_v63 = vsel %vm142_vm6, %v293_v61, %v292_v62 }
 0x12e   :  { %296 = vxpose.xlu1.b32.start.end [1/1] (short) (narrow) %v294_v63, 32  ;;  %v73_v63 = vld [vmem:[%s3474_s6 + $0x40] sm:$0xff] }
 0x162   :  { %v2798_v26 = vpop.permute.xlu2 %342 }
 0x16d   :  { %v2804_v33 = vpop.permute.xlu2 %352 }
 0x175   :  { %v2807_v36 = vpop.permute.xlu2 %357 }
 0x17d   :  { %v2810_v40 = vpop.permute.xlu2 %362 }
 0x181   :  { %2450 = vset.pattern.permute.xlu1 %v2580_v3  ;;  %v2837_v3 = vld [vmem:[%s3473_s5 + $0x28] sm:$0xff] }
 0x185   :  { %v2813_v43 = vpop.permute.xlu2 %367 }
 0x18b   :  { %v2801_v30 = vpop.permute.xlu0 %347 }
 0x1a0   :  { %332 = vperm.xlu1 %2450, %v65_v2  }
 0x1d2   :  { %v312_v0 = vpop.trf.xlu1 }
 0x1da   :  { %v313_v4 = vpop.trf.xlu1 }
 0x1db   :  { %v328_v10 = vpack.c.bf16 %v313_v4, %v312_v0 }
 0x1e2   :  { %v314_v5 = vpop.trf.xlu1 }
 0x1ea   :  { %v315_v7 = vpop.trf.xlu1 }
 0x1eb   :  { %v329_v9 = vpack.c.bf16 %v315_v7, %v314_v5 }
 0x1ed   :  { %444 = vmatpush.bf16.msra.mxu0 %v329_v9 }
 0x1f1   :  { %445 = vmatpush.bf16.msra.mxu0 %v328_v10 }
 0x1f4   :  { %2330 = vmatmul.msk.bf16.vlgmr.msra.gmra.mxu0 %vm145_vm7, %v2755_v11 }
 0x204   :  { %2331 = vmatmul.msk.bf16.gmra.mxu0 %vm145_vm7, %v2771_v15 }
 0x212   :  { %v2792_v20 = vpop.permute.xlu1 %332 }
 0x214   :  { %2332 = vmatmul.msk.bf16.gmra.mxu0 %vm145_vm7, %v2781_v18 }
 0x224   :  { %2333 = vmatmul.msk.bf16.gmra.mxu0 %vm145_vm7, %v2788_v19 }
 0x234   :  { %2334 = vmatmul.msk.bf16.gmra.mxu0 %vm145_vm7, %v2824_v56 }
 0x244   :  { %2335 = vmatmul.msk.bf16.gmra.mxu0 %vm145_vm7, %v2837_v3 }
 0x271   :  { %v447_v21 = vpop.f32.mrf.mxu0 }
 0x272   :  { %v448_v22 = vadd.f32 %v447_v21, %v2792_v20 }
 0x274   :  { %477 = vxpose.xlu2.b32.start.end [1/1] (short) (narrow) %v448_v22, 8 }
 0x279   :  { %v449_v24 = vpop.f32.mrf.mxu0 }
 0x27a   :  { %v450_v25 = vadd.f32 %v449_v24, %v2795_v23 }
 0x27c   :  { %509 = vxpose.xlu0.b32.start.end [1/1] (short) (narrow) %v450_v25, 8 }
 0x281   :  { %v452_v27 = vpop.f32.mrf.mxu0 }
 0x282   :  { %v453_v28 = vadd.f32 %v452_v27, %v2798_v26 }
 0x284   :  { %541 = vxpose.xlu2.b32.start.end [1/1] (short) (narrow) %v453_v28, 8 }
 0x289   :  { %v454_v31 = vpop.f32.mrf.mxu0 }
 0x28a   :  { %v455_v32 = vadd.f32 %v454_v31, %v2801_v30  ;;  %v74_v31 = vld [vmem:[%s3474_s6 + $0x48] sm:$0xff] }
 0x28c   :  { %573 = vxpose.xlu0.b32.start.end [1/1] (short) (narrow) %v455_v32, 8  ;;  %v75_v32 = vld [vmem:[%s3474_s6 + $0x50] sm:$0xff] }
 0x291   :  { %v457_v34 = vpop.f32.mrf.mxu0 }
 0x292   :  { %v458_v35 = vadd.f32 %v457_v34, %v2804_v33  ;;  %v76_v34 = vld [vmem:[%s3474_s6 + $0x58] sm:$0xff] }
 0x294   :  { %628 = vmatpush.msra.mxu1 %v458_v35  ;;  %v84_v35 = vld [vmem:[%s3476_s8 + $0x18] sm:$0xff] }
 0x299   :  { %v459_v37 = vpop.f32.mrf.mxu0 }
 0x29a   :  { %v460_v39 = vadd.f32 %v459_v37, %v2807_v36  ;;  %v81_v37 = vld [vmem:[%s3476_s8] sm:$0xff] }
 0x29c   :  { %651 = vmatpush.msra.mxu2 %v460_v39  ;;  %v82_v39 = vld [vmem:[%s3476_s8 + $0x8] sm:$0xff] }
 0x2a1   :  { %v462_v41 = vpop.f32.mrf.mxu0 }
 0x2a2   :  { %v463_v42 = vadd.f32 %v462_v41, %v2810_v40  ;;  %v83_v41 = vld [vmem:[%s3476_s8 + $0x10] sm:$0xff] }
 0x2a4   :  { %674 = vmatpush.msra.mxu3 %v463_v42  ;;  %v2881_v42 = vld [vmem:[%s3468_s0 + $0x3] sm:$0x1] }
 0x2a9   :  { %v464_v44 = vpop.f32.mrf.mxu0 }
 0x2aa   :  { %v465_v45 = vadd.f32 %v464_v44, %v2813_v43  ;;  %v2886_v44 = vld [vmem:[%s3468_s0 + $0x5] sm:$0x1] }
 0x2ac   :  { %697 = vmatpush.msrb.mxu1 %v465_v45  ;;  %v1327_v45 = vrot.slane %v2881_v42, 7 }
 0x30d   :  { %v493_v46 = vpop.trf.xlu2 }
 0x30e   :  { %v605_v47 = vmul.f32 0.35355338, %v493_v46  ;;  %v2892_v46 = vld [vmem:[%s3468_s0 + $0x1] sm:$0x1] }
 0x310   :  { %2336 = vmatmul.msk.f32.vlgmr.msra.gmra.mxu1 %vm609_vm12, %v605_v47  ;;  %v2897_v47 = vld [vmem:[%s3468_s0 + $0x7] sm:$0x1] }
 0x31d   :  { %v557_v48 = vpop.trf.xlu2 }
 0x31e   :  { %v607_v49 = vmul.f32 0.35355338, %v557_v48  ;;  %v1329_v48 = vrot.slane %v2886_v44, 6 }
 0x320   :  { %v525_v50 = vpop.trf.xlu0  ;;  %2338 = vmatmul.msk.f32.vlgmr.msra.gmra.mxu3 %vm609_vm12, %v607_v49  ;;  %v1328_v49 = vsel %vm124_vm0, %v1327_v45, %v2892_v46 }
 0x321   :  { %v606_v51 = vmul.f32 0.35355338, %v525_v50  ;;  %v2905_v50 = vld [vmem:[%s3468_s0 + $0x9] sm:$0x1] }
 0x323   :  { %2337 = vmatmul.msk.f32.vlgmr.msra.gmra.mxu2 %vm609_vm12, %v606_v51  ;;  %v1331_v51 = vrot.slane %v2897_v47, 5 }
 0x330   :  { %v589_v52 = vpop.trf.xlu0 }
 0x331   :  { %v608_v53 = vmul.f32 0.35355338, %v589_v52  ;;  %v1330_v52 = vsel %vm127_vm1, %v1329_v48, %v1328_v49 }
 0x333   :  { %2339 = vmatmul.msk.f32.vlgmr.msrb.gmra.mxu1 %vm609_vm12, %v608_v53 }
 0x38d   :  { %v630_v54 = vpop.f32.mrf.mxu1 }
 0x38e   :  { %v702_v55 = vsel %vm609_vm12, %v630_v54, -inf }
 0x38f   :  { %703 = vmax.xlane.f32.xlu2 %v702_v55  ;;  %v1333_v55 = vrot.slane %v2905_v50, 4 }
 0x3a3   :  { %v676_v59 = vpop.f32.mrf.mxu3 }
 0x3a4   :  { %v708_v60 = vsel %vm609_vm12, %v676_v59, -inf }
 0x3a6   :  { %v653_v57 = vpop.f32.mrf.mxu2 }
 0x3a7   :  { %v705_v58 = vsel %vm609_vm12, %v653_v57, -inf }
 0x3a8   :  { %706 = vmax.xlane.f32.xlu1 %v705_v58  ;;  %v2921_v58 = vld [vmem:[%s3468_s0 + $0xd] sm:$0x1] }
 0x3b0   :  { %v699_v61 = vpop.f32.mrf.mxu1  ;;  %709 = vmax.xlane.f32.xlu1 %v708_v60 }
 0x3b1   :  { %v711_v62 = vsel %vm609_vm12, %v699_v61, -inf }
 0x3b2   :  { %712 = vmax.xlane.f32.xlu0 %v711_v62  ;;  %v1337_v62 = vrot.slane %v2921_v58, 2 }
 0x3c9   :  { %372 = vperm.xlu1 %2450, %v73_v63  }
 0x402   :  { %v704_v0 = vpop.xlane.xlu2 %703 }
 0x403   :  { %v714_v1 = vsub.f32 %v630_v54, %v704_v0  ;;  %v2914_v54 = vld [vmem:[%s3468_s0 + $0xb] sm:$0x1] }
 0x405   :  { %v718_v2 = vmul.f32 1.442695, %v714_v1 }
 0x407   :  { %2463 = vpow2.f32 %v718_v2 }
 0x40d   :  { %v2841_v4 = vpop.eup %2463 }
 0x40e   :  { %v726_v5 = vsel %vm609_vm12, %v2841_v4, 0.0 }
 0x40f   :  { %727 = vadd.xlane.f32.xlu1 %v726_v5 }
 0x41b   :  { %v707_v6 = vpop.xlane.xlu1 %706 }
 0x41c   :  { %v715_v7 = vsub.f32 %v653_v57, %v707_v6  ;;  %v1332_v57 = vsel %vm130_vm2, %v1331_v51, %v1330_v52 }
 0x41d   :  { %v1334_v60 = vsel %vm133_vm3, %v1333_v55, %v1332_v57 }
 0x41e   :  { %v720_v8 = vmul.f32 1.442695, %v715_v7  ;;  %v467_v7 = vpop.f32.mrf.mxu0 }
 0x420   :  { %2465 = vpow2.f32 %v720_v8 }
 0x423   :  { %v710_v9 = vpop.xlane.xlu1 %709 }
 0x424   :  { %v716_v10 = vsub.f32 %v676_v59, %v710_v9  ;;  %v1335_v59 = vrot.slane %v2914_v54, 3 }
 0x425   :  { %v713_v12 = vpop.xlane.xlu0 %712 }
 0x426   :  { %v2845_v13 = vpop.eup %2465  ;;  %v722_v14 = vmul.f32 1.442695, %v716_v10  ;;  %v717_v17 = vsub.f32 %v699_v61, %v713_v12  ;;  %v2928_v61 = vld [vmem:[%s3468_s0 + $0xf] sm:$0x1]  ;;  %v1336_v63 = vsel %vm136_vm4, %v1335_v59, %v1334_v60  ;;  %v2581_v12 = vmov 4.0  }
 0x427   :  { %v729_v21 = vsel %vm609_vm12, %v2845_v13, 0.0  ;;  %v1339_v1 = vrot.slane %v2928_v61, 1  ;;  %v1338_v2 = vsel %vm139_vm5, %v1337_v62, %v1336_v63 }
 0x428   :  { %2467 = vpow2.f32 %v722_v14  ;;  %v724_v22 = vmul.f32 1.442695, %v717_v17  ;;  %730 = vadd.xlane.f32.xlu2 %v729_v21 }
 0x429   :  { %v1340_v5 = vsel %vm142_vm6, %v1339_v1, %v1338_v2 }
 0x42a   :  { %2469 = vpow2.f32 %v724_v22  ;;  %v1342_v9 = vsel %vm145_vm7, %v1340_v5, 0.0 }
 0x42e   :  { %v2849_v24 = vpop.eup %2467 }
 0x42f   :  { %v732_v25 = vsel %vm609_vm12, %v2849_v24, 0.0 }
 0x430   :  { %v2853_v27 = vpop.eup %2469  ;;  %733 = vadd.xlane.f32.xlu0 %v732_v25  ;;  %v469_v25 = vpop.f32.mrf.mxu0 }
 0x431   :  { %v735_v28 = vsel %vm609_vm12, %v2853_v27, 0.0 }
 0x432   :  { %736 = vadd.xlane.f32.xlu1 %v735_v28 }
 0x438   :  { %v472_v63 = vpop.f32.mrf.mxu0 }
 0x43b   :  { %v2909_v53 = vpop.permute.xlu1 %372 }
 0x43c   :  { %v468_v10 = vadd.f32 %v467_v7, %v2909_v53 }
 0x440   :  { %377 = vperm.xlu2 %2451, %v74_v31  }
 0x444   :  { %382 = vperm.xlu0 %2452, %v75_v32  }
 0x44b   :  { %387 = vperm.xlu1 %2450, %v76_v34  }
 0x44c   :  { %885 = vperm.xlu0 %2452, %v84_v35  }
 0x453   :  { %870 = vperm.xlu1 %2450, %v81_v37  }
 0x45b   :  { %875 = vperm.xlu1 %2450, %v82_v39  }
 0x463   :  { %880 = vperm.xlu1 %2450, %v83_v41  }
 0x482   :  { %v728_v0 = vpop.xlane.xlu1 %727 }
 0x483   :  { %2471 = vrcp.f32 %v728_v0 }
 0x484   :  { %2473 = vrcp.f32 %v2581_v12 }
 0x489   :  { %v2472_v6 = vpop.eup %2471 }
 0x48a   :  { %v742_v8 = vmul.f32 %v2472_v6, %v2841_v4  ;;  %v2474_v17 = vpop.eup %2473 }
 0x48b   :  { %v754_v21 = vmul.f32 4.0, %v2474_v17  ;;  %vm758_vm13 = vweird.f32 %v2474_v17 }
 0x48c   :  { %2340 = vmatpush.xpose.msk.msrb.mxu2 %vm609_vm12, %v742_v8  ;;  %v746_v45 = vsel %vm609_vm12, %v742_v8, 0.0 }
 0x48d   :  { %1343 = vadd.xlane.f32.xlu1 %v1342_v9  ;;  %v755_v32 = vsub.f32 1.0, %v754_v21 }
 0x48f   :  { %2341 = vmatmul.msk.f32.vlgmr.msrb.gmra.mxu2 %vm609_vm12, %v468_v10  ;;  %v756_v37 = vmul.f32 %v2474_v17, %v755_v32 }
 0x491   :  { %v757_v49 = vadd.f32 %v2474_v17, %v756_v37 }
 0x493   :  { %v2952_v59 = vsel %vm758_vm13, %v2474_v17, %v757_v49 }
 0x49b   :  { %v731_v14 = vpop.xlane.xlu2 %730 }
 0x49c   :  { %2475 = vrcp.f32 %v731_v14 }
 0x4a2   :  { %v2476_v22 = vpop.eup %2475 }
 0x4a3   :  { %v2940_v28 = vpop.permute.xlu2 %377  ;;  %v734_v4 = vpop.xlane.xlu0 %733  ;;  %v743_v31 = vmul.f32 %v2476_v22, %v2845_v13 }
 0x4a4   :  { %2477 = vrcp.f32 %v734_v4  ;;  %v470_v35 = vadd.f32 %v469_v25, %v2940_v28 }
 0x4a5   :  { %2342 = vmatpush.xpose.msk.msrb.mxu3 %vm609_vm12, %v743_v31  ;;  %v737_v34 = vpop.xlane.xlu1 %736  ;;  %v747_v39 = vsel %vm609_vm12, %v743_v31, 0.0 }
 0x4a6   :  { %2479 = vrcp.f32 %v737_v34  ;;  %v748_v51 = vadd.f32 %v747_v39, %v746_v45 }
 0x4a8   :  { %2343 = vmatmul.msk.f32.vlgmr.msrb.gmra.mxu3 %vm609_vm12, %v470_v35 }
 0x4aa   :  { %v2478_v41 = vpop.eup %2477 }
 0x4ab   :  { %v744_v48 = vmul.f32 %v2478_v41, %v2849_v24 }
 0x4ac   :  { %v2480_v13 = vpop.eup %2479 }
 0x4ad   :  { %v749_v52 = vsel %vm609_vm12, %v744_v48, 0.0  ;;  %v745_v55 = vmul.f32 %v2480_v13, %v2853_v27  ;;  %2344 = vmatpush.xpose.msk.msra.mxu1 %vm609_vm12, %v744_v48  ;;  %v474_v27 = vpop.f32.mrf.mxu0 }
 0x4ae   :  { %v750_v57 = vadd.f32 %v749_v52, %v748_v51 }
 0x4af   :  { %v751_v60 = vsel %vm609_vm12, %v745_v55, 0.0  ;;  %2346 = vmatpush.xpose.msk.msra.mxu2 %vm609_vm12, %v745_v55 }
 0x4b0   :  { %v752_v62 = vadd.f32 %v751_v60, %v750_v57 }
 0x4b2   :  { %v760_v24 = vmul.f32 %v2952_v59, %v752_v62 }
 0x4b4   :  { %761 = vst.msk [vmem:[#allocation4] sm:$0xff] %vm609_vm12, %v760_v24 }
 0x4b6   :  { %v2958_v0 = vpop.permute.xlu0 %382 }
 0x4b7   :  { %v473_v1 = vadd.f32 %v472_v63, %v2958_v0 }
 0x4b9   :  { %2345 = vmatmul.msk.f32.vlgmr.msra.gmra.mxu1 %vm609_vm12, %v473_v1 }
 0x4bd   :  { %v2962_v2 = vpop.permute.xlu1 %387 }
 0x4be   :  { %v475_v5 = vadd.f32 %v474_v27, %v2962_v2 }
 0x4c0   :  { %2347 = vmatmul.msk.f32.vlgmr.msra.gmra.mxu2 %vm609_vm12, %v475_v5 }
 0x4c5   :  { %v2966_v6 = vpop.permute.xlu1 %870 }
 0x4cd   :  { %v2968_v7 = vpop.permute.xlu1 %875 }
 0x4d5   :  { %v2970_v8 = vpop.permute.xlu1 %880 }
 0x500   :  { %v1344_v9 = vpop.xlane.xlu1 %1343 }
 0x501   :  { %v1345_v10 = vmul.f32 %v1344_v9, %v2695_v29 }
 0x503   :  { %v1347_v12 = vrot.slane %v1345_v10, 1  ;;  %v1348_v14 = vrot.slane %v1345_v10, 2  ;;  %v1349_v17 = vrot.slane %v1345_v10, 3  ;;  %v1350_v21 = vrot.slane %v1345_v10, 4 }
 0x504   :  { %v1351_v22 = vrot.slane %v1345_v10, 5  ;;  %v1352_v25 = vrot.slane %v1345_v10, 6  ;;  %v1353_v4 = vrot.slane %v1345_v10, 7  ;;  %v1362_v31 = vsub.f32 %v2892_v46, %v1345_v10 }
 0x505   :  { %v2975_v32 = vsub.f32 %v2881_v42, %v1347_v12  ;;  %v2978_v34 = vsub.f32 %v2886_v44, %v1348_v14  ;;  %v2981_v35 = vsub.f32 %v2897_v47, %v1349_v17  ;;  %v2984_v37 = vsub.f32 %v2905_v50, %v1350_v21 }
 0x506   :  { %v2987_v39 = vsub.f32 %v2914_v54, %v1351_v22  ;;  %v2990_v41 = vsub.f32 %v2921_v58, %v1352_v25  ;;  %v2993_v46 = vsub.f32 %v2928_v61, %v1353_v4  ;;  %v1370_v42 = vmul.f32 %v1362_v31, %v1362_v31  ;;  %v3020_v25 = vld [vmem:[%s3475_s7] sm:$0xff]  ;;  %v3027_v4 = vld [vmem:[%s3475_s7 + $0x8] sm:$0xff] }
 0x507   :  { %v1371_v44 = vmul.f32 %v2975_v32, %v2975_v32  ;;  %v1372_v47 = vmul.f32 %v2978_v34, %v2978_v34  ;;  %v1373_v50 = vmul.f32 %v2981_v35, %v2981_v35  ;;  %v1374_v54 = vmul.f32 %v2984_v37, %v2984_v37 }
 0x508   :  { %v1375_v58 = vmul.f32 %v2987_v39, %v2987_v39  ;;  %v1376_v61 = vmul.f32 %v2990_v41, %v2990_v41  ;;  %v1377_v45 = vmul.f32 %v2993_v46, %v2993_v46 }
 0x509   :  { %v1386_v48 = vrot.slane %v1371_v44, 7  ;;  %v1388_v49 = vrot.slane %v1372_v47, 6  ;;  %v1390_v13 = vrot.slane %v1373_v50, 5  ;;  %v1392_v51 = vrot.slane %v1374_v54, 4 }
 0x50a   :  { %v1394_v55 = vrot.slane %v1375_v58, 3  ;;  %v1396_v60 = vrot.slane %v1376_v61, 2  ;;  %v1398_v24 = vrot.slane %v1377_v45, 1 }
 0x50b   :  { %v1387_v52 = vsel %vm124_vm0, %v1386_v48, %v1370_v42 }
 0x50c   :  { %v1389_v57 = vsel %vm127_vm1, %v1388_v49, %v1387_v52 }
 0x50d   :  { %v1391_v62 = vsel %vm130_vm2, %v1390_v13, %v1389_v57 }
 0x50e   :  { %v1393_v63 = vsel %vm133_vm3, %v1392_v51, %v1391_v62 }
 0x50f   :  { %v1395_v1 = vsel %vm136_vm4, %v1394_v55, %v1393_v63 }
 0x510   :  { %v1397_v27 = vsel %vm139_vm5, %v1396_v60, %v1395_v1 }
 0x511   :  { %v1399_v5 = vsel %vm142_vm6, %v1398_v24, %v1397_v27 }
 0x512   :  { %v1401_v9 = vsel %vm145_vm7, %v1399_v5, 0.0  ;;  %v785_v10 = vpop.f32.mrf.mxu2 }
 0x513   :  { %1402 = vadd.xlane.f32.xlu1 %v1401_v9 }
 0x52b   :  { %v811_v21 = vpop.f32.mrf.mxu3 }
 0x52c   :  { %v866_v22 = vpack.c.bf16 %v811_v21, %v785_v10 }
 0x536   :  { %v837_v12 = vpop.f32.mrf.mxu1 }
 0x543   :  { %v863_v14 = vpop.f32.mrf.mxu2 }
 0x544   :  { %v867_v17 = vpack.c.bf16 %v863_v14, %v837_v12 }
 0x546   :  { %910 = vmatpush.bf16.msra.mxu3 %v867_v17 }
 0x54a   :  { %911 = vmatpush.bf16.msra.mxu3 %v866_v22 }
 0x54d   :  { %2356 = vmatmul.msk.bf16.vlgmr.msra.gmra.mxu3 %vm145_vm7, %v3020_v25 }
 0x55d   :  { %2357 = vmatmul.msk.bf16.gmra.mxu3 %vm145_vm7, %v3027_v4 }
 0x586   :  { %v1403_v42 = vpop.xlane.xlu1 %1402 }
 0x587   :  { %v1404_v44 = vmul.f32 %v1403_v42, %v2695_v29 }
 0x589   :  { %v1405_v47 = vadd.f32 1e-05, %v1404_v44 }
 0x58b   :  { %2481 = vrsqrt.f32 %v1405_v47  ;;  %vm1412_vm14 = vweird.f32 %v1405_v47 }
 0x591   :  { %v2482_v50 = vpop.eup %2481 }
 0x592   :  { %v1407_v54 = vmul.f32 %v2482_v50, %v1405_v47  ;;  %vm1413_vm15 = vweird.f32 %v2482_v50 }
 0x593   :  { %vm1414_vm8 = vmor %vm1412_vm14, %vm1413_vm15 }
 0x594   :  { %v1408_v58 = vmul.f32 %v2482_v50, %v1407_v54 }
 0x596   :  { %v1409_v61 = vmul.f32 0.5, %v1408_v58 }
 0x598   :  { %v1410_v45 = vsub.f32 1.5, %v1409_v61 }
 0x59a   :  { %v1411_v48 = vmul.f32 %v2482_v50, %v1410_v45 }
 0x59c   :  { %v1415_v49 = vsel %vm1414_vm8, %v2482_v50, %v1411_v48 }
 0x59d   :  { %v1417_v13 = vrot.slane %v1415_v49, 1  ;;  %v1418_v51 = vrot.slane %v1415_v49, 2  ;;  %v1432_v52 = vmul.f32 %v1415_v49, %v1362_v31  ;;  %v1419_v55 = vrot.slane %v1415_v49, 3 }
 0x59e   :  { %v1420_v57 = vrot.slane %v1415_v49, 4  ;;  %v1421_v60 = vrot.slane %v1415_v49, 5  ;;  %v1422_v62 = vrot.slane %v1415_v49, 6  ;;  %v1423_v24 = vrot.slane %v1415_v49, 7 }
 0x59f   :  { %v1433_v63 = vmul.f32 %v1417_v13, %v2975_v32  ;;  %v1434_v1 = vmul.f32 %v1418_v51, %v2978_v34  ;;  %v1435_v27 = vmul.f32 %v1419_v55, %v2981_v35  ;;  %v1440_v5 = vmul.f32 %v2710_v16, %v1432_v52 }
 0x5a0   :  { %v1436_v9 = vmul.f32 %v1420_v57, %v2984_v37  ;;  %v1437_v10 = vmul.f32 %v1421_v60, %v2987_v39  ;;  %v1438_v12 = vmul.f32 %v1422_v62, %v2990_v41  ;;  %v1439_v31 = vmul.f32 %v1423_v24, %v2993_v46 }
 0x5a1   :  { %v1441_v14 = vmul.f32 %v2710_v16, %v1433_v63  ;;  %v1442_v17 = vmul.f32 %v2710_v16, %v1434_v1  ;;  %v1443_v32 = vmul.f32 %v2710_v16, %v1435_v27  ;;  %v1448_v39 = vadd.f32 %v2720_v38, %v1440_v5 }
 0x5a2   :  { %v1444_v34 = vmul.f32 %v2710_v16, %v1436_v9  ;;  %v1445_v35 = vmul.f32 %v2710_v16, %v1437_v10  ;;  %v1446_v21 = vmul.f32 %v2710_v16, %v1438_v12  ;;  %v1447_v37 = vmul.f32 %v2710_v16, %v1439_v31  ;;  %v3065_v9 = vpop.permute.xlu0 %885 }
 0x5a3   :  { %v1449_v41 = vadd.f32 %v2720_v38, %v1441_v14  ;;  %v1450_v46 = vadd.f32 %v2720_v38, %v1442_v17  ;;  %v1451_v22 = vadd.f32 %v2720_v38, %v1443_v32 }
 0x5a4   :  { %v1452_v42 = vadd.f32 %v2720_v38, %v1444_v34  ;;  %v1453_v44 = vadd.f32 %v2720_v38, %v1445_v35  ;;  %v1454_v47 = vadd.f32 %v2720_v38, %v1446_v21  ;;  %v1455_v50 = vadd.f32 %v2720_v38, %v1447_v37 }
 0x5a5   :  { %v1464_v54 = vrot.slane %v1449_v41, 7  ;;  %v1466_v58 = vrot.slane %v1450_v46, 6  ;;  %v1468_v61 = vrot.slane %v1451_v22, 5 }
 0x5a6   :  { %v1470_v16 = vrot.slane %v1452_v42, 4  ;;  %v1472_v48 = vrot.slane %v1453_v44, 3  ;;  %v1474_v13 = vrot.slane %v1454_v47, 2  ;;  %v1476_v52 = vrot.slane %v1455_v50, 1  ;;  %v2511_v44 = vld [vmem:[%s3468_s0 + $0x2] sm:$0x1] }
 0x5a7   :  { %v1465_v45 = vsel %vm124_vm0, %v1464_v54, %v1448_v39  ;;  %v2512_v54 = vld [vmem:[%s3468_s0 + $0x4] sm:$0x1] }
 0x5a8   :  { %v1467_v49 = vsel %vm127_vm1, %v1466_v58, %v1465_v45  ;;  %v2514_v45 = vld [vmem:[%s3468_s0 + $0x8] sm:$0x1] }
 0x5a9   :  { %v1469_v51 = vsel %vm130_vm2, %v1468_v61, %v1467_v49  ;;  %v2513_v61 = vld [vmem:[%s3468_s0 + $0x6] sm:$0x1]  ;;  %v2515_v49 = vld [vmem:[%s3468_s0] sm:$0x1] }
 0x5aa   :  { %v1471_v55 = vsel %vm133_vm3, %v1470_v16, %v1469_v51  ;;  %v2516_v51 = vld [vmem:[%s3468_s0 + $0xa] sm:$0x1] }
 0x5ab   :  { %v1473_v57 = vsel %vm136_vm4, %v1472_v48, %v1471_v55 }
 0x5ac   :  { %v1475_v60 = vsel %vm139_vm5, %v1474_v13, %v1473_v57 }
 0x5ad   :  { %v1477_v38 = vsel %vm142_vm6, %v1476_v52, %v1475_v60  ;;  %v2517_v60 = vld [vmem:[%s3468_s0 + $0xc] sm:$0x1] }
 0x5ae   :  { %1479 = vxpose.xlu1.b32.start.end [1/1] (short) (narrow) %v1477_v38, 32 }
 0x5d0   :  { %v913_v62 = vpop.f32.mrf.mxu3 }
 0x5d1   :  { %v914_v24 = vadd.f32 %v913_v62, %v2966_v6  ;;  %v2518_v62 = vld [vmem:[%s3468_s0 + $0xe] sm:$0x1] }
 0x5d3   :  { %923 = vxpose.xlu2.b32.start [1/4] (short) (narrow) %v914_v24, 8 }
 0x5d8   :  { %v915_v63 = vpop.f32.mrf.mxu3 }
 0x5d9   :  { %v916_v1 = vadd.f32 %v915_v63, %v2968_v7 }
 0x5db   :  { %924 = vxpose.xlu2.b32.cont [2/4] (short) (narrow) %v916_v1, 8 }
 0x5e0   :  { %v918_v27 = vpop.f32.mrf.mxu3 }
 0x5e1   :  { %v919_v5 = vadd.f32 %v918_v27, %v2970_v8 }
 0x5e3   :  { %925 = vxpose.xlu2.b32.cont [3/4] (short) (narrow) %v919_v5, 8 }
 0x5e8   :  { %v920_v10 = vpop.f32.mrf.mxu3 }
 0x5e9   :  { %v921_v12 = vadd.f32 %v920_v10, %v3065_v9 }
 0x5eb   :  { %926 = vxpose.xlu2.b32.end [4/4] (short) (narrow) %v921_v12, 8 }
 0x652   :  { %v1495_v31 = vpop.trf.xlu1 }
 0x65a   :  { %v1496_v14 = vpop.trf.xlu1 }
 0x65b   :  { %v1511_v35 = vpack.c.bf16 %v1496_v14, %v1495_v31 }
 0x662   :  { %v1497_v17 = vpop.trf.xlu1 }
 0x66a   :  { %v1498_v32 = vpop.trf.xlu1 }
 0x66b   :  { %v1512_v34 = vpack.c.bf16 %v1498_v32, %v1497_v17 }
 0x66c   :  { %v939_v21 = vpop.trf.xlu2 }
 0x66d   :  { %v956_v37 = vrot.slane %v939_v21, 1  ;;  %v957_v39 = vrot.slane %v939_v21, 2  ;;  %v958_v41 = vrot.slane %v939_v21, 3  ;;  %1519 = vmatpush.bf16.msrb.mxu1 %v1512_v34  ;;  %v959_v46 = vrot.slane %v939_v21, 4 }
 0x66e   :  { %v960_v22 = vrot.slane %v939_v21, 5  ;;  %v961_v42 = vrot.slane %v939_v21, 6  ;;  %v962_v50 = vrot.slane %v939_v21, 7  ;;  %v3091_v13 = vadd.f32 %v2515_v49, %v939_v21  ;;  %v2439_v21 = vld [vmem:[%s3479_s11 + $0x38] sm:$0xff] }
 0x66f   :  { %v3071_v47 = vadd.f32 %v2511_v44, %v956_v37  ;;  %v3076_v58 = vadd.f32 %v2512_v54, %v957_v39  ;;  %v3081_v16 = vadd.f32 %v2513_v61, %v958_v41  ;;  %v3086_v48 = vadd.f32 %v2514_v45, %v959_v46  ;;  %1265 = vmatpush.bf16.msrb.mxu2 %v2439_v21  ;;  %v3157_v54 = vld [vmem:[%s3477_s9] sm:$0xff] }
 0x670   :  { %v3096_v52 = vadd.f32 %v2516_v51, %v960_v22  ;;  %v3103_v38 = vadd.f32 %v2517_v60, %v961_v42  ;;  %v3108_v24 = vadd.f32 %v2518_v62, %v962_v50  ;;  %2225 = vmatpush.bf16.msrb.mxu0 %v2439_v21  ;;  %v2436_v61 = vld [vmem:[%s3479_s11 + $0x20] sm:$0xff] }
 0x671   :  { %1520 = vmatpush.bf16.msrb.mxu1 %v1511_v35  ;;  %v987_v55 = vrot.slane %v3071_v47, 7  ;;  %v989_v57 = vrot.slane %v3076_v58, 6  ;;  %v991_v1 = vrot.slane %v3081_v16, 5  ;;  %v993_v5 = vrot.slane %v3086_v48, 4 }
 0x672   :  { %v995_v12 = vrot.slane %v3096_v52, 3  ;;  %v997_v14 = vrot.slane %v3103_v38, 2  ;;  %v999_v32 = vrot.slane %v3108_v24, 1 }
 0x673   :  { %v988_v63 = vsel %vm124_vm0, %v987_v55, %v3091_v13 }
 0x674   :  { %2400 = vmatmul.msk.bf16.vlgmr.msrb.gmra.mxu1 %vm145_vm7, %v2755_v11  ;;  %v990_v27 = vsel %vm127_vm1, %v989_v57, %v988_v63 }
 0x675   :  { %v992_v10 = vsel %vm130_vm2, %v991_v1, %v990_v27 }
 0x676   :  { %v994_v31 = vsel %vm133_vm3, %v993_v5, %v992_v10  ;;  %v2435_v10 = vld [vmem:[%s3479_s11 + $0x18] sm:$0xff] }
 0x677   :  { %v996_v17 = vsel %vm136_vm4, %v995_v12, %v994_v31 }
 0x678   :  { %v998_v34 = vsel %vm139_vm5, %v997_v14, %v996_v17 }
 0x679   :  { %v1000_v11 = vsel %vm142_vm6, %v999_v32, %v998_v34 }
 0x67a   :  { %v1002_v35 = vsel %vm145_vm7, %v1000_v11, 0.0 }
 0x67b   :  { %1003 = vadd.xlane.f32.xlu0 %v1002_v35 }
 0x684   :  { %2401 = vmatmul.msk.bf16.gmra.mxu1 %vm145_vm7, %v2771_v15  ;;  %v2438_v15 = vld [vmem:[%s3479_s11 + $0x30] sm:$0xff] }
 0x685   :  { %1266 = vmatpush.bf16.msrb.mxu2 %v2438_v15  ;;  %2226 = vmatpush.bf16.msrb.mxu0 %v2438_v15 }
 0x694   :  { %2402 = vmatmul.msk.bf16.gmra.mxu1 %vm145_vm7, %v2781_v18  ;;  %v3145_v18 = vld [vmem:[%s3477_s9 + $0x8] sm:$0xff] }
 0x695   :  { %1185 = vmatpush.bf16.msrb.mxu3 %v3145_v18 }
 0x699   :  { %1186 = vmatpush.bf16.msrb.mxu3 %v3157_v54 }
 0x6a4   :  { %2403 = vmatmul.msk.bf16.gmra.mxu1 %vm145_vm7, %v2788_v19  ;;  %v2437_v19 = vld [vmem:[%s3479_s11 + $0x28] sm:$0xff] }
 0x6a5   :  { %1267 = vmatpush.bf16.msrb.mxu2 %v2437_v19  ;;  %2227 = vmatpush.bf16.msrb.mxu0 %v2437_v19 }
 0x6a9   :  { %1268 = vmatpush.bf16.msrb.mxu2 %v2436_v61  ;;  %2228 = vmatpush.bf16.msrb.mxu0 %v2436_v61 }
 0x6ad   :  { %1269 = vmatpush.bf16.msrb.mxu2 %v2435_v10  ;;  %2229 = vmatpush.bf16.msrb.mxu0 %v2435_v10 }
 0x6b4   :  { %2404 = vmatmul.msk.bf16.gmra.mxu1 %vm145_vm7, %v2824_v56 }
 0x6c4   :  { %2405 = vmatmul.msk.bf16.gmra.mxu1 %vm145_vm7, %v2837_v3 }
 0x6ee   :  { %v1004_v56 = vpop.xlane.xlu0 %1003 }
 0x6ef   :  { %v1005_v3 = vmul.f32 %v1004_v56, %v2695_v29 }
 0x6f1   :  { %v3152_v37 = vpop.f32.mrf.mxu1  ;;  %v1007_v39 = vrot.slane %v1005_v3, 1  ;;  %v1008_v41 = vrot.slane %v1005_v3, 2  ;;  %v1009_v46 = vrot.slane %v1005_v3, 3  ;;  %v1010_v22 = vrot.slane %v1005_v3, 4 }
 0x6f2   :  { %v1011_v42 = vrot.slane %v1005_v3, 5  ;;  %v1012_v44 = vrot.slane %v1005_v3, 6  ;;  %v1013_v50 = vrot.slane %v1005_v3, 7  ;;  %v3163_v45 = vsub.f32 %v3091_v13, %v1005_v3 }
 0x6f3   :  { %v3166_v49 = vsub.f32 %v3071_v47, %v1007_v39  ;;  %v3169_v51 = vsub.f32 %v3076_v58, %v1008_v41  ;;  %v3172_v55 = vsub.f32 %v3081_v16, %v1009_v46  ;;  %v3175_v57 = vsub.f32 %v3086_v48, %v1010_v22  ;;  %v2434_v39 = vld [vmem:[%s3479_s11 + $0x10] sm:$0xff] }
 0x6f4   :  { %v3178_v60 = vsub.f32 %v3096_v52, %v1011_v42  ;;  %v3181_v62 = vsub.f32 %v3103_v38, %v1012_v44  ;;  %v3185_v63 = vsub.f32 %v3108_v24, %v1013_v50  ;;  %v1030_v31 = vmul.f32 %v3163_v45, %v3163_v45  ;;  %1270 = vmatpush.bf16.msrb.mxu2 %v2434_v39 }
 0x6f5   :  { %v1031_v1 = vmul.f32 %v3166_v49, %v3166_v49  ;;  %v1032_v27 = vmul.f32 %v3169_v51, %v3169_v51  ;;  %v1033_v5 = vmul.f32 %v3172_v55, %v3172_v55  ;;  %v1034_v12 = vmul.f32 %v3175_v57, %v3175_v57  ;;  %2230 = vmatpush.bf16.msrb.mxu0 %v2434_v39 }
 0x6f6   :  { %v1035_v14 = vmul.f32 %v3178_v60, %v3178_v60  ;;  %v1036_v34 = vmul.f32 %v3181_v62, %v3181_v62  ;;  %v1037_v35 = vmul.f32 %v3185_v63, %v3185_v63 }
 0x6f7   :  { %v1046_v17 = vrot.slane %v1031_v1, 7  ;;  %v1048_v32 = vrot.slane %v1032_v27, 6  ;;  %v1050_v15 = vrot.slane %v1033_v5, 5  ;;  %v1052_v3 = vrot.slane %v1034_v12, 4  ;;  %v2432_v12 = vld [vmem:[%s3479_s11] sm:$0xff] }
 0x6f8   :  { %v1054_v46 = vrot.slane %v1035_v14, 3  ;;  %v1056_v42 = vrot.slane %v1036_v34, 2  ;;  %v1058_v50 = vrot.slane %v1037_v35, 1  ;;  %v1523_v35 = vadd.f32 %v3152_v37, %v2792_v20 }
 0x6f9   :  { %v1524_v11 = vpop.f32.mrf.mxu1  ;;  %v1047_v21 = vsel %vm124_vm0, %v1046_v17, %v1030_v31 }
 0x6fa   :  { %v1525_v19 = vadd.f32 %v1524_v11, %v2795_v23  ;;  %v1049_v56 = vsel %vm127_vm1, %v1048_v32, %v1047_v21  ;;  %v2433_v23 = vld [vmem:[%s3479_s11 + $0x8] sm:$0xff]  ;;  %s2583_s11 = smov 128  }
 0x6fb   :  { %v1051_v41 = vsel %vm130_vm2, %v1050_v15, %v1049_v56  ;;  %1271 = vmatpush.bf16.msrb.mxu2 %v2433_v23  ;;  %2231 = vmatpush.bf16.msrb.mxu0 %v2433_v23 }
 0x6fc   :  { %1584 = vxpose.xlu2.b32.start.end [1/1] (short) (narrow) %v1525_v19, 8  ;;  %v1053_v22 = vsel %vm133_vm3, %v1052_v3, %v1051_v41 }
 0x6fd   :  { %v1055_v44 = vsel %vm136_vm4, %v1054_v46, %v1053_v22 }
 0x6fe   :  { %v1057_v61 = vsel %vm139_vm5, %v1056_v42, %v1055_v44  ;;  %v3241_v44 = vld [vmem:[%s3472_s4] ss:$0 sm:$0xff]  ;;  %s2276_s4 = sshll.u32 %s3481_s13, 4  ;;  %s2586_s13 = smov 32   ;;  %s2277_s4 = int_to_ptr.hbm [resolvable:$true] %s2276_s4 }
 0x6ff   :  { %v1059_v1 = vsel %vm142_vm6, %v1058_v50, %v1057_v61  ;;  %1272 = vmatpush.bf16.msrb.mxu2 %v2432_v12  ;;  %2232 = vmatpush.bf16.msrb.mxu0 %v2432_v12 }
 0x700   :  { %v1061_v27 = vsel %vm145_vm7, %v1059_v1, 0.0 }
 0x701   :  { %1062 = vadd.xlane.f32.xlu0 %v1061_v27  ;;  %v1527_v5 = vpop.f32.mrf.mxu1 }
 0x702   :  { %v1528_v10 = vadd.f32 %v1527_v5, %v2798_v26 }
 0x704   :  { %1616 = vxpose.xlu2.b32.start.end [1/1] (short) (narrow) %v1528_v10, 8 }
 0x709   :  { %v1529_v31 = vpop.f32.mrf.mxu1 }
 0x70a   :  { %v1530_v14 = vadd.f32 %v1529_v31, %v2801_v30 }
 0x70c   :  { %1648 = vxpose.xlu2.b32.start.end [1/1] (short) (narrow) %v1530_v14, 8 }
 0x711   :  { %v1532_v17 = vpop.f32.mrf.mxu1 }
 0x712   :  { %v1533_v32 = vadd.f32 %v1532_v17, %v2804_v33 }
 0x714   :  { %1702 = vmatpush.msra.mxu3 %v1533_v32 }
 0x719   :  { %v3227_v34 = vpop.f32.mrf.mxu1 }
 0x721   :  { %v1537_v11 = vpop.f32.mrf.mxu1 }
 0x722   :  { %v1538_v26 = vadd.f32 %v1537_v11, %v2810_v40  ;;  %v3236_v40 = vld [vmem:[%s3471_s3] ss:$0 sm:$0xff] }
 0x724   :  { %1748 = vmatpush.msra.mxu2 %v1538_v26 }
 0x72a   :  { %1552 = vxpose.xlu0.b32.start.end [1/1] (short) (narrow) %v1523_v35, 8 }
 0x774   :  { %v1063_v21 = vpop.xlane.xlu0 %1062 }
 0x775   :  { %v1064_v15 = vmul.f32 %v1063_v21, %v2695_v29 }
 0x777   :  { %v1065_v19 = vadd.f32 1e-05, %v1064_v15 }
 0x779   :  { %2483 = vrsqrt.f32 %v1065_v19  ;;  %vm1072_vm10 = vweird.f32 %v1065_v19 }
 0x77f   :  { %v2484_v30 = vpop.eup %2483 }
 0x780   :  { %v1067_v56 = vmul.f32 %v2484_v30, %v1065_v19  ;;  %vm1073_vm9 = vweird.f32 %v2484_v30 }
 0x781   :  { %vm1074_vm11 = vmor %vm1072_vm10, %vm1073_vm9  ;;  %vm1302_vm9 = vcmask 253952  }
 0x782   :  { %v1068_v3 = vmul.f32 %v2484_v30, %v1067_v56 }
 0x784   :  { %v1069_v33 = vmul.f32 0.5, %v1068_v3 }
 0x786   :  { %v1070_v39 = vsub.f32 1.5, %v1069_v33 }
 0x788   :  { %v1071_v41 = vmul.f32 %v2484_v30, %v1070_v39 }
 0x78a   :  { %v1075_v20 = vsel %vm1074_vm11, %v2484_v30, %v1071_v41 }
 0x78b   :  { %v1077_v37 = vrot.slane %v1075_v20, 1  ;;  %v1078_v46 = vrot.slane %v1075_v20, 2  ;;  %v1079_v22 = vrot.slane %v1075_v20, 3  ;;  %v1080_v42 = vrot.slane %v1075_v20, 4 }
 0x78c   :  { %v1081_v50 = vrot.slane %v1075_v20, 5  ;;  %v1082_v23 = vrot.slane %v1075_v20, 6  ;;  %v1092_v61 = vmul.f32 %v1075_v20, %v3163_v45  ;;  %v1083_v1 = vrot.slane %v1075_v20, 7 }
 0x78d   :  { %v1093_v27 = vmul.f32 %v1077_v37, %v3166_v49  ;;  %v1094_v5 = vmul.f32 %v1078_v46, %v3169_v51  ;;  %v1095_v10 = vmul.f32 %v1079_v22, %v3172_v55  ;;  %v1096_v12 = vmul.f32 %v1080_v42, %v3175_v57 }
 0x78e   :  { %v1103_v31 = vmul.f32 %v3236_v40, %v1092_v61  ;;  %v1097_v14 = vmul.f32 %v1081_v50, %v3178_v60  ;;  %v1098_v17 = vmul.f32 %v1082_v23, %v3181_v62  ;;  %v1099_v32 = vmul.f32 %v1083_v1, %v3185_v63 }
 0x78f   :  { %v1104_v11 = vmul.f32 %v3236_v40, %v1093_v27  ;;  %v1105_v45 = vmul.f32 %v3236_v40, %v1094_v5  ;;  %v1106_v49 = vmul.f32 %v3236_v40, %v1095_v10  ;;  %v1107_v51 = vmul.f32 %v3236_v40, %v1096_v12 }
 0x790   :  { %v1114_v55 = vadd.f32 %v3241_v44, %v1103_v31  ;;  %v1108_v57 = vmul.f32 %v3236_v40, %v1097_v14  ;;  %v1109_v26 = vmul.f32 %v3236_v40, %v1098_v17  ;;  %v1110_v60 = vmul.f32 %v3236_v40, %v1099_v32 }
 0x791   :  { %v1115_v62 = vadd.f32 %v3241_v44, %v1104_v11  ;;  %v1116_v63 = vadd.f32 %v3241_v44, %v1105_v45  ;;  %v1117_v35 = vadd.f32 %v3241_v44, %v1106_v49  ;;  %v1118_v21 = vadd.f32 %v3241_v44, %v1107_v51 }
 0x792   :  { %v1122_v15 = vpack.c.bf16 %v1114_v55, %v1114_v55  ;;  %v1119_v19 = vadd.f32 %v3241_v44, %v1108_v57  ;;  %v1120_v30 = vadd.f32 %v3241_v44, %v1109_v26  ;;  %v1121_v56 = vadd.f32 %v3241_v44, %v1110_v60 }
 0x793   :  { %v1123_v3 = vpack.c.bf16 %v1115_v62, %v1115_v62  ;;  %v1124_v33 = vpack.c.bf16 %v1116_v63, %v1116_v63  ;;  %v1125_v39 = vpack.c.bf16 %v1117_v35, %v1117_v35  ;;  %v1126_v41 = vpack.c.bf16 %v1118_v21, %v1118_v21  ;;  %v1539_v21 = vpop.f32.mrf.mxu1 }
 0x794   :  { %v1127_v20 = vpack.c.bf16 %v1119_v19, %v1119_v19  ;;  %v1128_v37 = vpack.c.bf16 %v1120_v30, %v1120_v30  ;;  %v1129_v46 = vpack.c.bf16 %v1121_v56, %v1121_v56  ;;  %v1141_v61 = vunpack.c.l.b16 %v1122_v15 }
 0x795   :  { %v1142_v22 = vunpack.c.l.b16 %v1123_v3  ;;  %v1143_v42 = vunpack.c.l.b16 %v1124_v33  ;;  %v1144_v50 = vunpack.c.l.b16 %v1125_v39  ;;  %v1145_v23 = vunpack.c.l.b16 %v1126_v41  ;;  %v1600_v35 = vpop.trf.xlu2 }
 0x796   :  { %v1146_v1 = vunpack.c.l.b16 %v1127_v20  ;;  %v1147_v10 = vunpack.c.l.b16 %v1128_v37  ;;  %v1148_v12 = vunpack.c.l.b16 %v1129_v46  ;;  %v1535_v63 = vadd.f32 %v3227_v34, %v2807_v36  ;;  %v3284_v36 = vld [vmem:[%s3478_s10] ss:$0 sm:$0xff]  ;;  %s2587_s10 = smov 2  }
 0x797   :  { %v1149_v27 = vrot.slane %v1142_v22, 7  ;;  %v1151_v5 = vrot.slane %v1143_v42, 6  ;;  %v1153_v14 = vrot.slane %v1144_v50, 5  ;;  %v1155_v32 = vrot.slane %v1145_v23, 4 }
 0x798   :  { %v1157_v45 = vrot.slane %v1146_v1, 3  ;;  %v1159_v51 = vrot.slane %v1147_v10, 2  ;;  %v1161_v57 = vrot.slane %v1148_v12, 1  ;;  %v1540_v30 = vadd.f32 %v1539_v21, %v2813_v43 }
 0x799   :  { %v1150_v31 = vsel %vm124_vm0, %v1149_v27, %v1141_v61  ;;  %v1681_v3 = vmul.f32 0.35355338, %v1600_v35 }
 0x79a   :  { %v1152_v17 = vsel %vm127_vm1, %v1151_v5, %v1150_v31 }
 0x79b   :  { %v1154_v11 = vsel %vm130_vm2, %v1153_v14, %v1152_v17 }
 0x79c   :  { %v1156_v49 = vsel %vm133_vm3, %v1155_v32, %v1154_v11 }
 0x79d   :  { %v1158_v55 = vsel %vm136_vm4, %v1157_v45, %v1156_v49  ;;  %v1632_v56 = vpop.trf.xlu2 }
 0x79e   :  { %v1160_v26 = vsel %vm139_vm5, %v1159_v51, %v1158_v55  ;;  %v1682_v45 = vmul.f32 0.35355338, %v1632_v56 }
 0x79f   :  { %v1162_v60 = vsel %vm142_vm6, %v1161_v57, %v1160_v26 }
 0x7a0   :  { %v1163_v62 = vpack.c.b16 %v1162_v60, %v1162_v60 }
 0x7a2   :  { %2366 = vmatmul.msk.bf16.vlgmr.msrb.gmra.mxu3 %vm145_vm7, %v1163_v62  ;;  %v3294_v62 = vld [vmem:[%s3480_s12] ss:$0 sm:$0xff] }
 0x7a3   :  { %1725 = vmatpush.msrb.mxu3 %v1535_v63 }
 0x7a5   :  { %v1664_v33 = vpop.trf.xlu2 }
 0x7a6   :  { %v1683_v39 = vmul.f32 0.35355338, %v1664_v33 }
 0x7ce   :  { %v1568_v15 = vpop.trf.xlu0 }
 0x7cf   :  { %v1680_v19 = vmul.f32 0.35355338, %v1568_v15 }
 0x7d1   :  { %2406 = vmatmul.msk.f32.vlgmr.msra.gmra.mxu3 %vm609_vm12, %v1680_v19 }
 0x7d2   :  { %1771 = vmatpush.msra.mxu3 %v1540_v30 }
 0x7d9   :  { %2407 = vmatmul.msk.f32.vlgmr.msrb.gmra.mxu3 %vm609_vm12, %v1681_v3 }
 0x7e1   :  { %2409 = vmatmul.msk.f32.vlgmr.msra.gmra.mxu3 %vm609_vm12, %v1683_v39 }
 0x825   :  { %v1188_v34 = vpop.f32.mrf.mxu3 }
 0x826   :  { %v1189_v41 = vadd.f32 %v3284_v36, %v1188_v34 }
 0x828   :  { %v2367_v43 = vmul.f32 -1.702, %v1189_v41 }
 0x82a   :  { %v1194_v20 = vmul.f32 1.442695, %v2367_v43 }
 0x82c   :  { %2485 = vpow2.f32 %v1194_v20 }
 0x82d   :  { %v1190_v37 = vpop.f32.mrf.mxu3 }
 0x832   :  { %v2486_v46 = vpop.eup %2485 }
 0x833   :  { %v1196_v22 = vadd.f32 1.0, %v2486_v46 }
 0x835   :  { %2487 = vrcp.f32 %v1196_v22  ;;  %v1208_v61 = vand.u32 2147483648, %v1196_v22  ;;  %v1206_v27 = vand.u32 2147483647, %v1196_v22  ;;  %vm1202_vm14 = vweird.f32 %v1196_v22 }
 0x837   :  { %v1209_v10 = vor.u32 1.1754944e-38, %v1208_v61  ;;  %vm1207_vm8 = vcmp.eq.f32.partialorder %v1206_v27, 8.507059e+37 }
 0x83b   :  { %v2488_v42 = vpop.eup %2487 }
 0x83c   :  { %v1198_v50 = vmul.f32 %v2488_v42, %v1196_v22  ;;  %vm1203_vm13 = vweird.f32 %v2488_v42 }
 0x83d   :  { %vm1204_vm15 = vmor %vm1202_vm14, %vm1203_vm13 }
 0x83e   :  { %v1199_v23 = vsub.f32 1.0, %v1198_v50 }
 0x840   :  { %v1200_v1 = vmul.f32 %v2488_v42, %v1199_v23 }
 0x842   :  { %v1201_v5 = vadd.f32 %v2488_v42, %v1200_v1 }
 0x844   :  { %v1205_v12 = vsel %vm1204_vm15, %v2488_v42, %v1201_v5 }
 0x845   :  { %v1210_v31 = vsel %vm1207_vm8, %v1209_v10, %v1205_v12  ;;  %v1542_v12 = vpop.f32.mrf.mxu1 }
 0x846   :  { %v1212_v14 = vmul.f32 %v1210_v31, %v1189_v41 }
 0x848   :  { %v1213_v17 = vpack.c.bf16 %v1212_v14, %v1212_v14 }
 0x84a   :  { %1273 = vmatmul.bf16.vlgmr.msrb.gmra.mxu2 %v1213_v17 }
 0x84d   :  { %v1544_v14 = vpop.f32.mrf.mxu1 }
 0x854   :  { %v1704_v32 = vpop.f32.mrf.mxu3 }
 0x855   :  { %v1776_v11 = vsel %vm609_vm12, %v1704_v32, -inf }
 0x856   :  { %1777 = vmax.xlane.f32.xlu2 %v1776_v11 }
 0x85a   :  { %2408 = vmatmul.msk.f32.vlgmr.msra.gmra.mxu2 %vm609_vm12, %v1682_v45 }
 0x85c   :  { %v1727_v49 = vpop.f32.mrf.mxu3 }
 0x85d   :  { %v1779_v51 = vsel %vm609_vm12, %v1727_v49, -inf }
 0x85e   :  { %1780 = vmax.xlane.f32.xlu0 %v1779_v51  ;;  %v1543_v51 = vadd.f32 %v1542_v12, %v2909_v53 }
 0x864   :  { %v1773_v55 = vpop.f32.mrf.mxu3 }
 0x865   :  { %v1785_v57 = vsel %vm609_vm12, %v1773_v55, -inf }
 0x866   :  { %1786 = vmax.xlane.f32.xlu2 %v1785_v57  ;;  %v1547_v57 = vpop.f32.mrf.mxu1 }
 0x8c9   :  { %v1778_v26 = vpop.xlane.xlu2 %1777 }
 0x8ca   :  { %v1788_v60 = vsub.f32 %v1704_v32, %v1778_v26 }
 0x8cc   :  { %v1792_v63 = vmul.f32 1.442695, %v1788_v60 }
 0x8cd   :  { %v1274_v35 = vpop.f32.mrf.mxu2 }
 0x8ce   :  { %2489 = vpow2.f32 %v1792_v63  ;;  %v1275_v21 = vadd.f32 %v3294_v62, %v1274_v35 }
 0x8d0   :  { %v1279_v15 = vrot.slane %v1275_v21, 1  ;;  %v1280_v19 = vrot.slane %v1275_v21, 2  ;;  %v1281_v30 = vrot.slane %v1275_v21, 3  ;;  %v1282_v56 = vrot.slane %v1275_v21, 4 }
 0x8d1   :  { %v1283_v3 = vrot.slane %v1275_v21, 5  ;;  %v1284_v33 = vrot.slane %v1275_v21, 6  ;;  %v1294_v39 = vadd.f32 %v1275_v21, %v3091_v13  ;;  %v1781_v34 = vpop.xlane.xlu0 %1780  ;;  %v1285_v41 = vrot.slane %v1275_v21, 7 }
 0x8d2   :  { %v1295_v43 = vadd.f32 %v1279_v15, %v3071_v47  ;;  %v1296_v20 = vadd.f32 %v1280_v19, %v3076_v58  ;;  %v1297_v37 = vadd.f32 %v1281_v30, %v3081_v16  ;;  %v1298_v46 = vadd.f32 %v1282_v56, %v3086_v48 }
 0x8d3   :  { %1303 = vst.msk [vmem:[#allocation2] sm:$0x1] %vm1302_vm9, %v1294_v39  ;;  %v1789_v22 = vsub.f32 %v1727_v49, %v1781_v34  ;;  %v1299_v50 = vadd.f32 %v1283_v3, %v3096_v52  ;;  %v1300_v13 = vadd.f32 %v1284_v33, %v3103_v38  ;;  %v1301_v16 = vadd.f32 %v1285_v41, %v3108_v24  ;;  %v1549_v3 = vpop.f32.mrf.mxu1 }
 0x8d4   :  { %v2490_v42 = vpop.eup %2489  ;;  %1304 = vst.msk [vmem:[#allocation2 + $0x2] sm:$0x1] %vm1302_vm9, %v1295_v43  ;;  %v1545_v19 = vadd.f32 %v1544_v14, %v2940_v28  ;;  %v1550_v39 = vadd.f32 %v1549_v3, %v2962_v2  ;;  %v2522_v14 = vld [vmem:[%s3468_s0 + $0x9] sm:$0x1] }
 0x8d5   :  { %1305 = vst.msk [vmem:[#allocation2 + $0x4] sm:$0x1] %vm1302_vm9, %v1296_v20  ;;  %v1794_v23 = vmul.f32 1.442695, %v1789_v22  ;;  %v1276_v47 = vpop.f32.mrf.mxu2  ;;  %v1800_v58 = vsel %vm609_vm12, %v2490_v42, 0.0  ;;  %v1548_v20 = vadd.f32 %v1547_v57, %v2958_v0 }
 0x8d6   :  { %1306 = vst.msk [vmem:[#allocation2 + $0x6] sm:$0x1] %vm1302_vm9, %v1297_v37  ;;  %1801 = vadd.xlane.f32.xlu2 %v1800_v58  ;;  %v2525_v57 = vld [vmem:[%s3468_s0 + $0xd] sm:$0x1] }
 0x8d7   :  { %1307 = vst.msk [vmem:[#allocation2 + $0x8] sm:$0x1] %vm1302_vm9, %v1298_v46  ;;  %2491 = vpow2.f32 %v1794_v23 }
 0x8d8   :  { %1308 = vst.msk [vmem:[#allocation2 + $0xa] sm:$0x1] %vm1302_vm9, %v1299_v50 }
 0x8d9   :  { %1309 = vst.msk [vmem:[#allocation2 + $0xc] sm:$0x1] %vm1302_vm9, %v1300_v13  ;;  %v1787_v48 = vpop.xlane.xlu2 %1786 }
 0x8da   :  { %1310 = vst.msk [vmem:[#allocation2 + $0xe] sm:$0x1] %vm1302_vm9, %v1301_v16  ;;  %v1791_v52 = vsub.f32 %v1773_v55, %v1787_v48 }
 0x8dc   :  { %v1798_v38 = vmul.f32 1.442695, %v1791_v52 }
 0x8dd   :  { %v2492_v61 = vpop.eup %2491  ;;  %v1750_v1 = vpop.f32.mrf.mxu2 }
 0x8de   :  { %2493 = vpow2.f32 %v1798_v38  ;;  %v1803_v24 = vsel %vm609_vm12, %v2492_v61, 0.0  ;;  %v1782_v27 = vsel %vm609_vm12, %v1750_v1, -inf }
 0x8df   :  { %1804 = vadd.xlane.f32.xlu0 %v1803_v24  ;;  %1783 = vmax.xlane.f32.xlu1 %v1782_v27 }
 0x8e4   :  { %v2494_v5 = vpop.eup %2493 }
 0x8e5   :  { %v1809_v10 = vsel %vm609_vm12, %v2494_v5, 0.0 }
 0x8e7   :  { %1810 = vadd.xlane.f32.xlu0 %v1809_v10 }
 0x949   :  { %v1802_v31 = vpop.xlane.xlu2 %1801 }
 0x94a   :  { %2495 = vrcp.f32 %v1802_v31 }
 0x950   :  { %v2496_v17 = vpop.eup %2495 }
 0x951   :  { %v1816_v32 = vmul.f32 %v2496_v17, %v2490_v42 }
 0x952   :  { %v1805_v11 = vpop.xlane.xlu0 %1804  ;;  %v1784_v45 = vpop.xlane.xlu1 %1783 }
 0x953   :  { %2497 = vrcp.f32 %v1805_v11  ;;  %v1790_v49 = vsub.f32 %v1750_v1, %v1784_v45  ;;  %2410 = vmatpush.xpose.msk.msrb.mxu2 %vm609_vm12, %v1816_v32  ;;  %v1820_v35 = vsel %vm609_vm12, %v1816_v32, 0.0  ;;  %v2523_v32 = vld [vmem:[%s3468_s0 + $0x1] sm:$0x1]  ;;  %v2524_v45 = vld [vmem:[%s3468_s0 + $0xb] sm:$0x1] }
 0x955   :  { %v1796_v55 = vmul.f32 1.442695, %v1790_v49 }
 0x956   :  { %2411 = vmatmul.msk.f32.vlgmr.msrb.gmra.mxu2 %vm609_vm12, %v1543_v51 }
 0x957   :  { %2499 = vpow2.f32 %v1796_v55 }
 0x959   :  { %v2498_v26 = vpop.eup %2497 }
 0x95a   :  { %v1817_v60 = vmul.f32 %v2498_v26, %v2492_v61  ;;  %v1811_v63 = vpop.xlane.xlu0 %1810 }
 0x95b   :  { %2501 = vrcp.f32 %v1811_v63 }
 0x95c   :  { %v1821_v21 = vsel %vm609_vm12, %v1817_v60, 0.0  ;;  %2412 = vmatpush.xpose.msk.msrb.mxu3 %vm609_vm12, %v1817_v60  ;;  %v2526_v60 = vld [vmem:[%s3468_s0 + $0xf] sm:$0x1] }
 0x95d   :  { %v2500_v15 = vpop.eup %2499  ;;  %v1822_v30 = vadd.f32 %v1821_v21, %v1820_v35 }
 0x95e   :  { %v1806_v53 = vsel %vm609_vm12, %v2500_v15, 0.0 }
 0x95f   :  { %2413 = vmatmul.msk.f32.vlgmr.msrb.gmra.mxu3 %vm609_vm12, %v1545_v19  ;;  %1807 = vadd.xlane.f32.xlu2 %v1806_v53 }
 0x961   :  { %v2502_v56 = vpop.eup %2501 }
 0x962   :  { %v1819_v33 = vmul.f32 %v2502_v56, %v2494_v5 }
 0x964   :  { %2416 = vmatpush.xpose.msk.msra.mxu3 %vm609_vm12, %v1819_v33  ;;  %v1825_v46 = vsel %vm609_vm12, %v1819_v33, 0.0 }
 0x967   :  { %2417 = vmatmul.msk.f32.vlgmr.msra.gmra.mxu3 %vm609_vm12, %v1550_v39 }
 0x968   :  { %2196 = vmatpush.bf16.msrb.mxu3 %v3145_v18 }
 0x96c   :  { %2197 = vmatpush.bf16.msrb.mxu3 %v3157_v54 }
 0x9d2   :  { %v1808_v28 = vpop.xlane.xlu2 %1807 }
 0x9d3   :  { %2503 = vrcp.f32 %v1808_v28 }
 0x9d9   :  { %v2504_v34 = vpop.eup %2503  ;;  %v1853_v22 = vpop.f32.mrf.mxu2 }
 0x9da   :  { %v1818_v41 = vmul.f32 %v2504_v34, %v2500_v15 }
 0x9dc   :  { %v1823_v43 = vsel %vm609_vm12, %v1818_v41, 0.0  ;;  %2414 = vmatpush.xpose.msk.msra.mxu2 %vm609_vm12, %v1818_v41 }
 0x9dd   :  { %v1824_v37 = vadd.f32 %v1823_v43, %v1822_v30 }
 0x9df   :  { %v1826_v2 = vadd.f32 %v1825_v46, %v1824_v37  ;;  %2415 = vmatmul.msk.f32.vlgmr.msra.gmra.mxu2 %vm609_vm12, %v1548_v20 }
 0x9e1   :  { %v1827_v18 = vmul.f32 %v1826_v2, %v2952_v59 }
 0x9e2   :  { %v1879_v54 = vpop.f32.mrf.mxu3 }
 0x9e3   :  { %1829 = vst.msk [vmem:[#allocation4 + $0x8] sm:$0xff] %vm609_vm12, %v1827_v18  ;;  %v1934_v23 = vpack.c.bf16 %v1879_v54, %v1853_v22 }
 0x9ea   :  { %v1931_v42 = vpop.f32.mrf.mxu3 }
 0xa62   :  { %v1905_v50 = vpop.f32.mrf.mxu2 }
 0xa63   :  { %v1935_v13 = vpack.c.bf16 %v1931_v42, %v1905_v50 }
 0xa65   :  { %1942 = vmatpush.bf16.msrb.mxu2 %v1935_v13 }
 0xa69   :  { %1943 = vmatpush.bf16.msrb.mxu2 %v1934_v23 }
 0xa6c   :  { %2418 = vmatmul.msk.bf16.vlgmr.msrb.gmra.mxu2 %vm145_vm7, %v3020_v25 }
 0xa7c   :  { %2419 = vmatmul.msk.bf16.gmra.mxu2 %vm145_vm7, %v3027_v4 }
 0xaef   :  { %v1945_v0 = vpop.f32.mrf.mxu2 }
 0xaf0   :  { %v1946_v47 = vadd.f32 %v1945_v0, %v2966_v6 }
 0xaf2   :  { %1955 = vxpose.xlu2.b32.start [1/4] (short) (narrow) %v1946_v47, 8 }
 0xaf7   :  { %v1947_v59 = vpop.f32.mrf.mxu2 }
 0xaf8   :  { %v1948_v58 = vadd.f32 %v1947_v59, %v2968_v7  ;;  %v2519_v7 = vld [vmem:[%s3468_s0 + $0x3] sm:$0x1] }
 0xafa   :  { %1956 = vxpose.xlu2.b32.cont [2/4] (short) (narrow) %v1948_v58, 8 }
 0xaff   :  { %v1950_v16 = vpop.f32.mrf.mxu2 }
 0xb00   :  { %v1951_v48 = vadd.f32 %v1950_v16, %v2970_v8  ;;  %v2520_v8 = vld [vmem:[%s3468_s0 + $0x5] sm:$0x1] }
 0xb02   :  { %1957 = vxpose.xlu2.b32.cont [3/4] (short) (narrow) %v1951_v48, 8 }
 0xb07   :  { %v1952_v52 = vpop.f32.mrf.mxu2 }
 0xb08   :  { %v1953_v38 = vadd.f32 %v1952_v52, %v3065_v9  ;;  %v2521_v9 = vld [vmem:[%s3468_s0 + $0x7] sm:$0x1]  ;;  %s2582_s0 = smov [#allocation4]  }
 0xb09   :  { %s2287_s8 = sshll.u32 %s2582_s0, 4  ;;  %s2288_s8 = int_to_ptr.vmem [resolvable:$true] %s2287_s8 }
 0xb0a   :  { %1958 = vxpose.xlu2.b32.end [4/4] (short) (narrow) %v1953_v38, 8  ;;  %2295 = dma.vmem_to_hbm [thread:$0]  %s2288_s8, 256, %s2290_s29, [#allocation5], %s2583_s11, %s2583_s11, %s2584_s30  }
 0xb8b   :  { %v1971_v25 = vpop.trf.xlu2 }
 0xb8c   :  { %v1988_v61 = vrot.slane %v1971_v25, 1  ;;  %v1989_v1 = vrot.slane %v1971_v25, 2  ;;  %v1990_v4 = vrot.slane %v1971_v25, 3  ;;  %v1991_v24 = vrot.slane %v1971_v25, 4 }
 0xb8d   :  { %v1992_v27 = vrot.slane %v1971_v25, 5  ;;  %v1993_v6 = vrot.slane %v1971_v25, 6  ;;  %v1994_v31 = vrot.slane %v1971_v25, 7  ;;  %v3369_v11 = vadd.f32 %v2523_v32, %v1971_v25 }
 0xb8e   :  { %v3349_v5 = vadd.f32 %v2519_v7, %v1988_v61  ;;  %v3354_v10 = vadd.f32 %v2520_v8, %v1989_v1  ;;  %v3359_v12 = vadd.f32 %v2521_v9, %v1990_v4  ;;  %v3364_v17 = vadd.f32 %v2522_v14, %v1991_v24 }
 0xb8f   :  { %v3374_v49 = vadd.f32 %v2524_v45, %v1992_v27  ;;  %v3381_v26 = vadd.f32 %v2525_v57, %v1993_v6  ;;  %v3386_v63 = vadd.f32 %v2526_v60, %v1994_v31 }
 0xb90   :  { %v2019_v51 = vrot.slane %v3349_v5, 7  ;;  %v2021_v55 = vrot.slane %v3354_v10, 6  ;;  %v2023_v21 = vrot.slane %v3359_v12, 5  ;;  %v2025_v19 = vrot.slane %v3364_v17, 4 }
 0xb91   :  { %v2027_v53 = vrot.slane %v3374_v49, 3  ;;  %v2029_v3 = vrot.slane %v3381_v26, 2  ;;  %v2031_v39 = vrot.slane %v3386_v63, 1 }
 0xb92   :  { %v2020_v35 = vsel %vm124_vm0, %v2019_v51, %v3369_v11 }
 0xb93   :  { %v2022_v15 = vsel %vm127_vm1, %v2021_v55, %v2020_v35 }
 0xb94   :  { %v2024_v30 = vsel %vm130_vm2, %v2023_v21, %v2022_v15 }
 0xb95   :  { %v2026_v56 = vsel %vm133_vm3, %v2025_v19, %v2024_v30 }
 0xb96   :  { %v2028_v33 = vsel %vm136_vm4, %v2027_v53, %v2026_v56 }
 0xb97   :  { %v2030_v28 = vsel %vm139_vm5, %v2029_v3, %v2028_v33 }
 0xb98   :  { %v2032_v34 = vsel %vm142_vm6, %v2031_v39, %v2030_v28 }
 0xb99   :  { %v2034_v41 = vsel %vm145_vm7, %v2032_v34, 0.0 }
 0xb9a   :  { %2035 = vadd.xlane.f32.xlu0 %v2034_v41 }
 0xc0d   :  { %v2036_v43 = vpop.xlane.xlu0 %2035 }
 0xc0e   :  { %v2037_v20 = vmul.f32 %v2036_v43, %v2695_v29 }
 0xc10   :  { %v2039_v37 = vrot.slane %v2037_v20, 1  ;;  %v2040_v46 = vrot.slane %v2037_v20, 2  ;;  %v2041_v2 = vrot.slane %v2037_v20, 3  ;;  %v2042_v18 = vrot.slane %v2037_v20, 4 }
 0xc11   :  { %v2043_v54 = vrot.slane %v2037_v20, 5  ;;  %v2044_v22 = vrot.slane %v2037_v20, 6  ;;  %v2045_v42 = vrot.slane %v2037_v20, 7  ;;  %v2054_v50 = vsub.f32 %v3369_v11, %v2037_v20 }
 0xc12   :  { %v2055_v13 = vsub.f32 %v3349_v5, %v2039_v37  ;;  %v2056_v23 = vsub.f32 %v3354_v10, %v2040_v46  ;;  %v2057_v0 = vsub.f32 %v3359_v12, %v2041_v2  ;;  %v2058_v47 = vsub.f32 %v3364_v17, %v2042_v18 }
 0xc13   :  { %v2059_v59 = vsub.f32 %v3374_v49, %v2043_v54  ;;  %v2060_v58 = vsub.f32 %v3381_v26, %v2044_v22  ;;  %v2061_v16 = vsub.f32 %v3386_v63, %v2045_v42  ;;  %v2062_v61 = vmul.f32 %v2054_v50, %v2054_v50 }
 0xc14   :  { %v2063_v48 = vmul.f32 %v2055_v13, %v2055_v13  ;;  %v2064_v52 = vmul.f32 %v2056_v23, %v2056_v23  ;;  %v2065_v38 = vmul.f32 %v2057_v0, %v2057_v0  ;;  %v2066_v25 = vmul.f32 %v2058_v47, %v2058_v47 }
 0xc15   :  { %v2067_v1 = vmul.f32 %v2059_v59, %v2059_v59  ;;  %v2068_v27 = vmul.f32 %v2060_v58, %v2060_v58  ;;  %v2069_v6 = vmul.f32 %v2061_v16, %v2061_v16 }
 0xc16   :  { %v2078_v4 = vrot.slane %v2063_v48, 7  ;;  %v2080_v24 = vrot.slane %v2064_v52, 6  ;;  %v2082_v8 = vrot.slane %v2065_v38, 5  ;;  %v2084_v31 = vrot.slane %v2066_v25, 4 }
 0xc17   :  { %v2086_v32 = vrot.slane %v2067_v1, 3  ;;  %v2088_v51 = vrot.slane %v2068_v27, 2  ;;  %v2090_v57 = vrot.slane %v2069_v6, 1 }
 0xc18   :  { %v2079_v7 = vsel %vm124_vm0, %v2078_v4, %v2062_v61 }
 0xc19   :  { %v2081_v9 = vsel %vm127_vm1, %v2080_v24, %v2079_v7 }
 0xc1a   :  { %v2083_v14 = vsel %vm130_vm2, %v2082_v8, %v2081_v9 }
 0xc1b   :  { %v2085_v45 = vsel %vm133_vm3, %v2084_v31, %v2083_v14 }
 0xc1c   :  { %v2087_v55 = vsel %vm136_vm4, %v2086_v32, %v2085_v45 }
 0xc1d   :  { %v2089_v60 = vsel %vm139_vm5, %v2088_v51, %v2087_v55 }
 0xc1e   :  { %v2091_v35 = vsel %vm142_vm6, %v2090_v57, %v2089_v60 }
 0xc1f   :  { %v2093_v21 = vsel %vm145_vm7, %v2091_v35, 0.0 }
 0xc20   :  { %2094 = vadd.xlane.f32.xlu1 %v2093_v21 }
 0xc93   :  { %v2095_v15 = vpop.xlane.xlu1 %2094 }
 0xc94   :  { %v2096_v19 = vmul.f32 %v2095_v15, %v2695_v29 }
 0xc96   :  { %v2097_v30 = vadd.f32 1e-05, %v2096_v19 }
 0xc98   :  { %2505 = vrsqrt.f32 %v2097_v30  ;;  %vm2104_vm10 = vweird.f32 %v2097_v30 }
 0xc9e   :  { %v2506_v53 = vpop.eup %2505 }
 0xc9f   :  { %v2099_v56 = vmul.f32 %v2506_v53, %v2097_v30  ;;  %vm2105_vm12 = vweird.f32 %v2506_v53 }
 0xca0   :  { %vm2106_vm11 = vmor %vm2104_vm10, %vm2105_vm12 }
 0xca1   :  { %v2100_v3 = vmul.f32 %v2506_v53, %v2099_v56 }
 0xca3   :  { %v2101_v33 = vmul.f32 0.5, %v2100_v3 }
 0xca5   :  { %v2102_v39 = vsub.f32 1.5, %v2101_v33 }
 0xca7   :  { %v2103_v28 = vmul.f32 %v2506_v53, %v2102_v39 }
 0xca9   :  { %v2107_v34 = vsel %vm2106_vm11, %v2506_v53, %v2103_v28 }
 0xcaa   :  { %v2109_v41 = vrot.slane %v2107_v34, 1  ;;  %v2110_v43 = vrot.slane %v2107_v34, 2  ;;  %v2111_v20 = vrot.slane %v2107_v34, 3  ;;  %v2112_v37 = vrot.slane %v2107_v34, 4 }
 0xcab   :  { %v2113_v46 = vrot.slane %v2107_v34, 5  ;;  %v2114_v2 = vrot.slane %v2107_v34, 6  ;;  %v2124_v18 = vmul.f32 %v2107_v34, %v2054_v50  ;;  %v2115_v29 = vrot.slane %v2107_v34, 7 }
 0xcac   :  { %v2125_v54 = vmul.f32 %v2109_v41, %v2055_v13  ;;  %v2126_v22 = vmul.f32 %v2110_v43, %v2056_v23  ;;  %v2127_v42 = vmul.f32 %v2111_v20, %v2057_v0  ;;  %v2128_v48 = vmul.f32 %v2112_v37, %v2058_v47 }
 0xcad   :  { %v2132_v52 = vmul.f32 %v3236_v40, %v2124_v18  ;;  %v2129_v38 = vmul.f32 %v2113_v46, %v2059_v59  ;;  %v2130_v25 = vmul.f32 %v2114_v2, %v2060_v58  ;;  %v2131_v61 = vmul.f32 %v2115_v29, %v2061_v16 }
 0xcae   :  { %v2133_v1 = vmul.f32 %v3236_v40, %v2125_v54  ;;  %v2134_v4 = vmul.f32 %v3236_v40, %v2126_v22  ;;  %v2135_v24 = vmul.f32 %v3236_v40, %v2127_v42  ;;  %v2136_v27 = vmul.f32 %v3236_v40, %v2128_v48 }
 0xcaf   :  { %v2140_v50 = vadd.f32 %v3241_v44, %v2132_v52  ;;  %v2137_v13 = vmul.f32 %v3236_v40, %v2129_v38  ;;  %v2138_v23 = vmul.f32 %v3236_v40, %v2130_v25  ;;  %v2139_v0 = vmul.f32 %v3236_v40, %v2131_v61 }
 0xcb0   :  { %v2141_v47 = vadd.f32 %v3241_v44, %v2133_v1  ;;  %v2142_v59 = vadd.f32 %v3241_v44, %v2134_v4  ;;  %v2143_v58 = vadd.f32 %v3241_v44, %v2135_v24  ;;  %v2144_v16 = vadd.f32 %v3241_v44, %v2136_v27 }
 0xcb1   :  { %v2148_v6 = vpack.c.bf16 %v2140_v50, %v2140_v50  ;;  %v2145_v7 = vadd.f32 %v3241_v44, %v2137_v13  ;;  %v2146_v8 = vadd.f32 %v3241_v44, %v2138_v23  ;;  %v2147_v9 = vadd.f32 %v3241_v44, %v2139_v0 }
 0xcb2   :  { %v2149_v31 = vpack.c.bf16 %v2141_v47, %v2141_v47  ;;  %v2150_v14 = vpack.c.bf16 %v2142_v59, %v2142_v59  ;;  %v2151_v32 = vpack.c.bf16 %v2143_v58, %v2143_v58  ;;  %v2152_v45 = vpack.c.bf16 %v2144_v16, %v2144_v16 }
 0xcb3   :  { %v2153_v40 = vpack.c.bf16 %v2145_v7, %v2145_v7  ;;  %v2154_v51 = vpack.c.bf16 %v2146_v8, %v2146_v8  ;;  %v2155_v55 = vpack.c.bf16 %v2147_v9, %v2147_v9  ;;  %v2164_v15 = vunpack.c.l.b16 %v2148_v6 }
 0xcb4   :  { %v2165_v57 = vunpack.c.l.b16 %v2149_v31  ;;  %v2166_v60 = vunpack.c.l.b16 %v2150_v14  ;;  %v2167_v35 = vunpack.c.l.b16 %v2151_v32  ;;  %v2168_v21 = vunpack.c.l.b16 %v2152_v45 }
 0xcb5   :  { %v2169_v19 = vunpack.c.l.b16 %v2153_v40  ;;  %v2170_v56 = vunpack.c.l.b16 %v2154_v51  ;;  %v2171_v3 = vunpack.c.l.b16 %v2155_v55 }
 0xcb6   :  { %v2172_v30 = vrot.slane %v2165_v57, 7  ;;  %v2174_v53 = vrot.slane %v2166_v60, 6  ;;  %v2176_v44 = vrot.slane %v2167_v35, 5  ;;  %v2178_v28 = vrot.slane %v2168_v21, 4 }
 0xcb7   :  { %v2180_v41 = vrot.slane %v2169_v19, 3  ;;  %v2182_v20 = vrot.slane %v2170_v56, 2  ;;  %v2184_v46 = vrot.slane %v2171_v3, 1 }
 0xcb8   :  { %v2173_v33 = vsel %vm124_vm0, %v2172_v30, %v2164_v15 }
 0xcb9   :  { %v2175_v39 = vsel %vm127_vm1, %v2174_v53, %v2173_v33 }
 0xcba   :  { %v2177_v34 = vsel %vm130_vm2, %v2176_v44, %v2175_v39 }
 0xcbb   :  { %v2179_v43 = vsel %vm133_vm3, %v2178_v28, %v2177_v34 }
 0xcbc   :  { %v2181_v37 = vsel %vm136_vm4, %v2180_v41, %v2179_v43 }
 0xcbd   :  { %v2183_v2 = vsel %vm139_vm5, %v2182_v20, %v2181_v37 }
 0xcbe   :  { %v2185_v18 = vsel %vm142_vm6, %v2184_v46, %v2183_v2 }
 0xcbf   :  { %v2186_v29 = vpack.c.b16 %v2185_v18, %v2185_v18 }
 0xcc1   :  { %2420 = vmatmul.msk.bf16.vlgmr.msrb.gmra.mxu3 %vm145_vm7, %v2186_v29 }
 0xd44   :  { %v2199_v54 = vpop.f32.mrf.mxu3 }
 0xd45   :  { %v2200_v22 = vadd.f32 %v3284_v36, %v2199_v54 }
 0xd47   :  { %v2421_v42 = vmul.f32 -1.702, %v2200_v22 }
 0xd49   :  { %v2205_v48 = vmul.f32 1.442695, %v2421_v42 }
 0xd4b   :  { %2507 = vpow2.f32 %v2205_v48 }
 0xd4c   :  { %v2201_v52 = vpop.f32.mrf.mxu3 }
 0xd51   :  { %v2508_v38 = vpop.eup %2507 }
 0xd52   :  { %v2207_v25 = vadd.f32 1.0, %v2508_v38 }
 0xd54   :  { %2509 = vrcp.f32 %v2207_v25  ;;  %v2219_v24 = vand.u32 2147483648, %v2207_v25  ;;  %v2217_v50 = vand.u32 2147483647, %v2207_v25  ;;  %vm2213_vm1 = vweird.f32 %v2207_v25 }
 0xd56   :  { %v2220_v23 = vor.u32 1.1754944e-38, %v2219_v24  ;;  %vm2218_vm3 = vcmp.eq.f32.partialorder %v2217_v50, 8.507059e+37 }
 0xd5a   :  { %v2510_v61 = vpop.eup %2509 }
 0xd5b   :  { %v2209_v1 = vmul.f32 %v2510_v61, %v2207_v25  ;;  %vm2214_vm0 = vweird.f32 %v2510_v61 }
 0xd5c   :  { %vm2215_vm2 = vmor %vm2213_vm1, %vm2214_vm0 }
 0xd5d   :  { %v2210_v4 = vsub.f32 1.0, %v2209_v1 }
 0xd5f   :  { %v2211_v27 = vmul.f32 %v2510_v61, %v2210_v4 }
 0xd61   :  { %v2212_v13 = vadd.f32 %v2510_v61, %v2211_v27 }
 0xd63   :  { %v2216_v0 = vsel %vm2215_vm2, %v2510_v61, %v2212_v13 }
 0xd64   :  { %v2221_v36 = vsel %vm2218_vm3, %v2220_v23, %v2216_v0 }
 0xd65   :  { %v2223_v47 = vmul.f32 %v2221_v36, %v2200_v22 }
 0xd67   :  { %v2224_v59 = vpack.c.bf16 %v2223_v47, %v2223_v47 }
 0xd69   :  { %2233 = vmatmul.bf16.vlgmr.msrb.gmra.mxu0 %v2224_v59 }
 0xde6   :  { %v2234_v58 = vpop.f32.mrf.mxu0 }
 0xde7   :  { %v2235_v16 = vadd.f32 %v3294_v62, %v2234_v58 }
 0xde9   :  { %v2239_v6 = vrot.slane %v2235_v16, 1  ;;  %v2240_v7 = vrot.slane %v2235_v16, 2  ;;  %v2241_v8 = vrot.slane %v2235_v16, 3  ;;  %v2242_v9 = vrot.slane %v2235_v16, 4 }
 0xdea   :  { %v2243_v31 = vrot.slane %v2235_v16, 5  ;;  %v2244_v14 = vrot.slane %v2235_v16, 6  ;;  %v2254_v32 = vadd.f32 %v2235_v16, %v3369_v11  ;;  %v2245_v45 = vrot.slane %v2235_v16, 7 }
 0xdeb   :  { %v2255_v40 = vadd.f32 %v2239_v6, %v3349_v5  ;;  %v2256_v51 = vadd.f32 %v2240_v7, %v3354_v10  ;;  %v2257_v55 = vadd.f32 %v2241_v8, %v3359_v12  ;;  %v2258_v57 = vadd.f32 %v2242_v9, %v3364_v17 }
 0xdec   :  { %2262 = vst.msk [vmem:[#allocation2 + $0x1] sm:$0x1] %vm1302_vm9, %v2254_v32  ;;  %v2259_v62 = vadd.f32 %v2243_v31, %v3374_v49  ;;  %v2260_v5 = vadd.f32 %v2244_v14, %v3381_v26  ;;  %v2261_v12 = vadd.f32 %v2245_v45, %v3386_v63 }
 0xded   :  { %2263 = vst.msk [vmem:[#allocation2 + $0x3] sm:$0x1] %vm1302_vm9, %v2255_v40 }
 0xdee   :  { %2264 = vst.msk [vmem:[#allocation2 + $0x5] sm:$0x1] %vm1302_vm9, %v2256_v51  ;;  %v2236_v10 = vpop.f32.mrf.mxu0 }
 0xdef   :  { %2265 = vst.msk [vmem:[#allocation2 + $0x7] sm:$0x1] %vm1302_vm9, %v2257_v55 }
 0xdf0   :  { %2266 = vst.msk [vmem:[#allocation2 + $0x9] sm:$0x1] %vm1302_vm9, %v2258_v57 }
 0xdf1   :  { %2267 = vst.msk [vmem:[#allocation2 + $0xb] sm:$0x1] %vm1302_vm9, %v2259_v62 }
 0xdf2   :  { %2268 = vst.msk [vmem:[#allocation2 + $0xd] sm:$0x1] %vm1302_vm9, %v2260_v5 }
 0xdf3   :  { %2269 = vst.msk [vmem:[#allocation2 + $0xf] sm:$0x1] %vm1302_vm9, %v2261_v12 }
 0xdf4   :  { %2282 = dma.vmem_to_hbm [thread:$0]  %s2275_s1, 256, %s2277_s4, [#allocation3], %s2586_s13, %s2586_s13, %s2587_s10  }
 0xdf5   :  { %2575 = dma.done.wait [#allocation3], 256  }
 0xdf6   :  { %2576 = vsyncadd [#allocation3], 4294967040 }
 0xdf7   :  { %2577 = dma.done.wait [#allocation5], 256  }
 0xdf8   :  { %2578 = vsyncadd [#allocation5], 4294967040 }
 0xdf9   :  { %2304 = vsyncpa [#allocation3], 1 }
 0xdfa   :  { %2305 = vsyncpa [#allocation5], 1 }

</bundles_post_ra>
